<compile_context>
chip_gen: v5e
topology: v5e:2x2
jax: 0.10.0
libtpu: 0.0.40
codegen_flags: <defaults>
</compile_context>

<pallas_src>
import math
from functools import partial

import jax
import jax.numpy as jnp
from jax.experimental import pallas as pl
from jax.experimental.pallas import tpu as pltpu


# ----------------------------------------------------------------------------
# helpers
# ----------------------------------------------------------------------------
def _pick_tile(dim, target, align):
    """Largest tile <= target that is a multiple of `align` and divides `dim`;
    falls back to the full dim (always a legal BlockSpec block)."""
    if dim <= target:
        return dim
    t = (target // align) * align
    while t >= align:
        if dim % t == 0:
            return t
        t -= align
    return dim


# ----------------------------------------------------------------------------
# Tiled Linear (y = x @ W^T, W in nn.Linear [out, in] layout, no bias)
# ----------------------------------------------------------------------------
def _linear_kernel(x_ref, w_ref, o_ref, acc_ref):
    @pl.when(pl.program_id(2) == 0)
    def _init():
        acc_ref[...] = jnp.zeros(acc_ref.shape, acc_ref.dtype)

    # x: [tm, tk], w: [tn, tk] -> contract the K axes on the MXU (fp32 acc).
    acc_ref[...] += jax.lax.dot_general(
        x_ref[...], w_ref[...],
        dimension_numbers=(((1,), (1,)), ((), ())),
        preferred_element_type=jnp.float32)

    @pl.when(pl.program_id(2) == pl.num_programs(2) - 1)
    def _done():
        o_ref[...] = acc_ref[...].astype(o_ref.dtype)


def pallas_linear(x, w, *, tm=256, tn=256, tk=512):
    """x: [M, K], w: [N, K] (nn.Linear weight) -> [M, N].  No weight transpose."""
    M, K = x.shape
    N, Kw = w.shape
    assert K == Kw
    tm = _pick_tile(M, tm, 8)      # sublane axis of x / out
    tn = _pick_tile(N, tn, 128)    # lane axis of out (keep it lane-dense)
    tk = _pick_tile(K, tk, 128)    # lane axis of x / w
    grid = (M // tm, N // tn, K // tk)
    return pl.pallas_call(
        _linear_kernel,
        out_shape=jax.ShapeDtypeStruct((M, N), x.dtype),
        grid=grid,
        in_specs=[
            pl.BlockSpec((tm, tk), lambda i, j, k: (i, k)),
            pl.BlockSpec((tn, tk), lambda i, j, k: (j, k)),
        ],
        out_specs=pl.BlockSpec((tm, tn), lambda i, j, k: (i, j)),
        scratch_shapes=[pltpu.VMEM((tm, tn), jnp.float32)],
        compiler_params=pltpu.CompilerParams(
            dimension_semantics=("parallel", "parallel", "arbitrary"),
            vmem_limit_bytes=48 * 1024 * 1024),
    )(x, w)


# ----------------------------------------------------------------------------
# Flash-style fused RoPE + attention (online softmax, GQA via index_map)
# ----------------------------------------------------------------------------
def _flash_attn_kernel(q_ref, k_ref, v_ref, cos_q_ref, sin_q_ref,
                       cos_k_ref, sin_k_ref, mask_ref, o_ref,
                       acc_ref, m_ref, l_ref,
                       *, num_heads, num_kv_heads, head_dim):
    ki = pl.program_id(2)
    n_rep = num_heads // num_kv_heads
    d2 = head_dim // 2
    inv_sqrt_d = 1.0 / math.sqrt(head_dim)

    @pl.when(ki == 0)
    def _init():
        m_ref[...] = jnp.full(m_ref.shape, -jnp.inf, dtype=m_ref.dtype)
        l_ref[...] = jnp.zeros(l_ref.shape, l_ref.dtype)
        acc_ref[...] = jnp.zeros(acc_ref.shape, acc_ref.dtype)

    cos_q = cos_q_ref[...]
    sin_q = sin_q_ref[...]
    cos_k = cos_k_ref[...]
    sin_k = sin_k_ref[...]
    mask = mask_ref[...].astype(jnp.float32)          # [TQ, TK] additive mask

    # Hoisted +-1 sign vector: rotate_half(x) == pltpu.roll(x, d2) * sign.
    lane = jax.lax.broadcasted_iota(jnp.int32, (1, head_dim), 1)
    sign = jnp.where(lane < d2, -1.0, 1.0).astype(cos_q.dtype)

    def rope(x, cos, sin):
        # HF rotate_half RoPE; the roll runs on the XLU slot, muls on the VPU.
        return x * cos + pltpu.roll(x, shift=d2, axis=1) * sign * sin

    # RoPE on K once per *KV* head (not once per query head); V sliced once.
    k_rot, v_heads = [], []
    for hk in range(num_kv_heads):
        sl = slice(hk * head_dim, (hk + 1) * head_dim)
        k_rot.append(rope(k_ref[:, sl], cos_k, sin_k))
        v_heads.append(v_ref[:, sl])

    for h in range(num_heads):
        hk = h // n_rep                       # repeat_interleave head mapping
        sl = slice(h * head_dim, (h + 1) * head_dim)

        # Fold 1/sqrt(d) into Q (RoPE is linear, so the order is irrelevant).
        qh = rope(q_ref[:, sl] * inv_sqrt_d, cos_q, sin_q)

        # scores: [TQ, TK], fp32 accumulate on the MXU (Q . K^T).
        s = jax.lax.dot_general(
            qh, k_rot[hk],
            dimension_numbers=(((1,), (1,)), ((), ())),
            preferred_element_type=jnp.float32)
        s = s + mask

        m_prev = m_ref[:, h:h + 1]
        l_prev = l_ref[:, h:h + 1]
        m_new = jnp.maximum(m_prev, jnp.max(s, axis=-1, keepdims=True))
        alpha = jnp.exp(m_prev - m_new)
        p = jnp.exp(s - m_new)

        # P cast to V's dtype (bf16 MXU feed when activations are bf16);
        # fp32 accumulation preserved via preferred_element_type.
        pv = jnp.dot(p.astype(v_heads[hk].dtype), v_heads[hk],
                     preferred_element_type=jnp.float32)
        acc_ref[:, sl] = alpha * acc_ref[:, sl] + pv
        l_ref[:, h:h + 1] = alpha * l_prev + jnp.sum(p, axis=-1, keepdims=True)
        m_ref[:, h:h + 1] = m_new

    @pl.when(ki == pl.num_programs(2) - 1)
    def _finalize():
        for h in range(num_heads):
            sl = slice(h * head_dim, (h + 1) * head_dim)
            inv_l = pl.reciprocal(l_ref[:, h:h + 1], approx=True)   # EUP, ~free
            o_ref[:, sl] = (acc_ref[:, sl] * inv_l).astype(o_ref.dtype)


def pallas_flash_attention(qkv, cos, sin, mask, *, num_heads, num_kv_heads,
                           head_dim, tq=128, tk=128):
    """qkv:  [B, S, (H + 2*Hkv) * D]  fused projection output.
       cos/sin: [B, S, D] RoPE tables.  mask: [B, 1, S, S] additive.
       Returns [B, S, H*D] with heads packed lane-dense on the last axis."""
    B, S, _ = qkv.shape
    n_rep = num_heads // num_kv_heads
    q_width = num_heads * head_dim
    kv_width = num_kv_heads * head_dim
    # Block indices of the K / V column slabs inside the fused qkv output,
    # expressed in units of the kv slab width (query_pos is a multiple of it).
    k_blk = q_width // kv_width          # == n_rep
    v_blk = k_blk + 1

    tq = _pick_tile(S, tq, 8)
    tk = _pick_tile(S, tk, 128)
    grid = (B, S // tq, S // tk)         # KV axis last ("arbitrary")

    kernel = partial(_flash_attn_kernel, num_heads=num_heads,
                     num_kv_heads=num_kv_heads, head_dim=head_dim)

    return pl.pallas_call(
        kernel,
        out_shape=jax.ShapeDtypeStruct((B, S, q_width), qkv.dtype),
        grid=grid,
        in_specs=[
            # Q / K / V read straight out of the fused qkv tensor (no split,
            # no transpose, no repeat_kv copy).
            pl.BlockSpec((None, tq, q_width), lambda b, qi, ki: (b, qi, 0)),
            pl.BlockSpec((None, tk, kv_width), lambda b, qi, ki: (b, ki, k_blk)),
            pl.BlockSpec((None, tk, kv_width), lambda b, qi, ki: (b, ki, v_blk)),
            # RoPE tables at the Q positions and at the K positions.
            pl.BlockSpec((None, tq, head_dim), lambda b, qi, ki: (b, qi, 0)),
            pl.BlockSpec((None, tq, head_dim), lambda b, qi, ki: (b, qi, 0)),
            pl.BlockSpec((None, tk, head_dim), lambda b, qi, ki: (b, ki, 0)),
            pl.BlockSpec((None, tk, head_dim), lambda b, qi, ki: (b, ki, 0)),
            # Additive attention mask, DMA'd in [TQ, TK] tiles only.
            pl.BlockSpec((None, None, tq, tk), lambda b, qi, ki: (b, 0, qi, ki)),
        ],
        out_specs=pl.BlockSpec((None, tq, q_width), lambda b, qi, ki: (b, qi, 0)),
        scratch_shapes=[
            pltpu.VMEM((tq, q_width), jnp.float32),     # running PV accumulator
            pltpu.VMEM((tq, num_heads), jnp.float32),   # running row max per head
            pltpu.VMEM((tq, num_heads), jnp.float32),   # running row sum per head
        ],
        compiler_params=pltpu.CompilerParams(
            dimension_semantics=("parallel", "parallel", "arbitrary"),
            vmem_limit_bytes=48 * 1024 * 1024),
    )(qkv, qkv, qkv, cos, sin, cos, sin, mask)


# ----------------------------------------------------------------------------
# Phi3Attention forward (glue in plain JAX, hot paths in Pallas)
# ----------------------------------------------------------------------------
def phi3_attention_forward(hidden_states, cos, sin, attention_mask,
                           qkv_w, o_w, *, num_heads, num_kv_heads, head_dim):
    B, S, hidden = hidden_states.shape

    # Fused qkv projection (Linear, no bias) -- weight kept in [out, in] layout.
    qkv = pallas_linear(hidden_states.reshape(B * S, hidden), qkv_w)
    qkv = qkv.reshape(B, S, -1)

    # Fused RoPE + flash attention.  Q/K/V split and GQA head sharing happen
    # inside the BlockSpec index_maps; output is lane-dense [B, S, H*D].
    attn = pallas_flash_attention(
        qkv, cos, sin, attention_mask,
        num_heads=num_heads, num_kv_heads=num_kv_heads, head_dim=head_dim)

    # [B, S, H*D] is already contiguous -> this reshape is free (no transpose).
    out = pallas_linear(attn.reshape(B * S, num_heads * head_dim), o_w)
    return out.reshape(B, S, -1)


# ----------------------------------------------------------------------------
# Pure-JAX reference (mirrors the PyTorch module)
# ----------------------------------------------------------------------------
def reference_forward(hidden_states, cos, sin, attention_mask,
                      qkv_w, o_w, *, num_heads, num_kv_heads, head_dim):
    B, S, hidden = hidden_states.shape
    n_rep = num_heads // num_kv_heads
    query_pos = num_heads * head_dim
    kv_size = num_kv_heads * head_dim

    qkv = hidden_states @ qkv_w.T
    q = qkv[..., :query_pos].reshape(B, S, num_heads, head_dim).transpose(0, 2, 1, 3)
    k = qkv[..., query_pos:query_pos + kv_size].reshape(B, S, num_kv_heads, head_dim).transpose(0, 2, 1, 3)
    v = qkv[..., query_pos + kv_size:].reshape(B, S, num_kv_heads, head_dim).transpose(0, 2, 1, 3)

    def rotate_half(x):
        d2 = x.shape[-1] // 2
        return jnp.concatenate([-x[..., d2:], x[..., :d2]], axis=-1)

    c = cos[:, None, :, :]
    s = sin[:, None, :, :]
    q = q * c + rotate_half(q) * s
    k = k * c + rotate_half(k) * s

    k = jnp.repeat(k, n_rep, axis=1)
    v = jnp.repeat(v, n_rep, axis=1)

    scores = (q @ k.transpose(0, 1, 3, 2)) / math.sqrt(head_dim)
    scores = scores + attention_mask
    p = jax.nn.softmax(scores.astype(jnp.float32), axis=-1).astype(v.dtype)
    attn = p @ v
    attn = attn.transpose(0, 2, 1, 3).reshape(B, S, -1)
    return attn @ o_w.T


# ----------------------------------------------------------------------------
if __name__ == "__main__":
    # Small Phi3-like config (head_dim kept at 128 so all lane slices/rolls
    # are 128-aligned; for Phi3-mini's head_dim=96, pad heads to 128 to keep
    # the MXU/lane axis full).
    B, S = 2, 256
    num_heads = 4
    num_kv_heads = 2
    head_dim = 128
    hidden = num_heads * head_dim                       # 512
    op_size = hidden + 2 * num_kv_heads * head_dim      # 1024
    rope_theta = 10000.0

    key = jax.random.PRNGKey(0)
    k1, k2, k3 = jax.random.split(key, 3)

    hidden_states = jax.random.normal(k1, (B, S, hidden), dtype=jnp.float32)
    qkv_w = 0.02 * jax.random.normal(k2, (op_size, hidden), dtype=jnp.float32)
    o_w = 0.02 * jax.random.normal(k3, (hidden, hidden), dtype=jnp.float32)

    # RoPE position embeddings (cos, sin): [B, S, head_dim], HF layout.
    inv_freq = 1.0 / (rope_theta ** (jnp.arange(0, head_dim, 2, dtype=jnp.float32) / head_dim))
    pos = jnp.arange(S, dtype=jnp.float32)
    freqs = pos[:, None] * inv_freq[None, :]            # [S, D/2]
    emb = jnp.concatenate([freqs, freqs], axis=-1)      # [S, D]
    cos = jnp.broadcast_to(jnp.cos(emb), (B, S, head_dim)).astype(jnp.float32)
    sin = jnp.broadcast_to(jnp.sin(emb), (B, S, head_dim)).astype(jnp.float32)

    # Additive causal attention mask: [B, 1, S, S]
    causal = jnp.tril(jnp.ones((S, S), dtype=bool))
    big_neg = jnp.finfo(jnp.float32).min
    attention_mask = jnp.where(causal, 0.0, big_neg).astype(jnp.float32)
    attention_mask = jnp.broadcast_to(attention_mask[None, None], (B, 1, S, S))

    out = phi3_attention_forward(
        hidden_states, cos, sin, attention_mask, qkv_w, o_w,
        num_heads=num_heads, num_kv_heads=num_kv_heads, head_dim=head_dim)
    out = jax.block_until_ready(out)

    ref = reference_forward(
        hidden_states, cos, sin, attention_mask, qkv_w, o_w,
        num_heads=num_heads, num_kv_heads=num_kv_heads, head_dim=head_dim)

    assert out.shape == (B, S, hidden)
    # Tolerance accounts for pl.reciprocal(approx=True) in the softmax finalize.
    assert jnp.allclose(out, ref, atol=1e-3, rtol=1e-2), (
        "mismatch vs reference, max abs err = "
        f"{float(jnp.max(jnp.abs(out - ref))):.3e}")

    print("KERNEL_OK")
</pallas_src>

<mosaic_0001>
module attributes {stable_mosaic.version = 11 : i64} {
  func.func @_linear_kernel(%arg0: i32, %arg1: i32, %arg2: i32, %arg3: memref<256x512xf32, #tpu.memory_space<vmem>>, %arg4: memref<256x512xf32, #tpu.memory_space<vmem>>, %arg5: memref<256x256xf32, #tpu.memory_space<vmem>>, %arg6: memref<256x256xf32, #tpu.memory_space<vmem>>) attributes {dimension_semantics = [#tpu.dimension_semantics<parallel>, #tpu.dimension_semantics<parallel>, #tpu.dimension_semantics<arbitrary>], iteration_bounds = array<i64: 2, 4, 1>, scalar_prefetch = 0 : i64, scratch_operands = 1 : i64, tpu.core_type = #tpu.core_type<tc>, window_params = [{transform_indices = @transform_0, window_bounds = array<i64: 256, 512>}, {transform_indices = @transform_1, window_bounds = array<i64: 256, 512>}, {transform_indices = @transform_2, window_bounds = array<i64: 256, 256>}]} {
    %c0_i32 = arith.constant 0 : i32
    %0 = arith.cmpi eq, %arg2, %c0_i32 : i32
    %1 = arith.extui %0 : i1 to i32
    %c0_i32_0 = arith.constant 0 : i32
    %2 = arith.cmpi ne, %1, %c0_i32_0 : i32
    scf.if %2 {
      %cst_10 = arith.constant 0.000000e+00 : f32
      %12 = vector.broadcast %cst_10 : f32 to vector<256x256xf32>
      %c0_11 = arith.constant 0 : index
      %c0_12 = arith.constant 0 : index
      %13 = vector.load %arg6[%c0_11, %c0_12] : memref<256x256xf32, #tpu.memory_space<vmem>>, vector<256x256xf32>
      tpu.vector_store %arg6[%c0_11, %c0_12], %12 {strides = array<i32>} : memref<256x256xf32, #tpu.memory_space<vmem>>, vector<256x256xf32>,
    } else {
    }
    %c0 = arith.constant 0 : index
    %c0_1 = arith.constant 0 : index
    %3 = vector.load %arg6[%c0, %c0_1] : memref<256x256xf32, #tpu.memory_space<vmem>>, vector<256x256xf32>
    %c0_2 = arith.constant 0 : index
    %c0_3 = arith.constant 0 : index
    %4 = vector.load %arg3[%c0_2, %c0_3] : memref<256x512xf32, #tpu.memory_space<vmem>>, vector<256x512xf32>
    %c0_4 = arith.constant 0 : index
    %c0_5 = arith.constant 0 : index
    %5 = vector.load %arg4[%c0_4, %c0_5] : memref<256x512xf32, #tpu.memory_space<vmem>>, vector<256x512xf32>
    %cst = arith.constant dense<0.000000e+00> : vector<256x256xf32>
    %6 = tpu.matmul %4, %5, %cst {dimension_numbers = #tpu.dot_dimension_numbers<[1], [1], [0], [0], [0, 0, 1, 0], [], []>} : vector<256x512xf32>, vector<256x512xf32>, vector<256x256xf32> -> vector<256x256xf32>
    %7 = arith.addf %3, %6 : vector<256x256xf32>
    %c0_6 = arith.constant 0 : index
    %c0_7 = arith.constant 0 : index
    %8 = vector.load %arg6[%c0_6, %c0_7] : memref<256x256xf32, #tpu.memory_space<vmem>>, vector<256x256xf32>
    tpu.vector_store %arg6[%c0_6, %c0_7], %7 {strides = array<i32>} : memref<256x256xf32, #tpu.memory_space<vmem>>, vector<256x256xf32>,
    %c0_i32_8 = arith.constant 0 : i32
    %9 = arith.cmpi eq, %arg2, %c0_i32_8 : i32
    %10 = arith.extui %9 : i1 to i32
    %c0_i32_9 = arith.constant 0 : i32
    %11 = arith.cmpi ne, %10, %c0_i32_9 : i32
    scf.if %11 {
      %c0_10 = arith.constant 0 : index
      %c0_11 = arith.constant 0 : index
      %12 = vector.load %arg6[%c0_10, %c0_11] : memref<256x256xf32, #tpu.memory_space<vmem>>, vector<256x256xf32>
      %c0_12 = arith.constant 0 : index
      %c0_13 = arith.constant 0 : index
      %13 = vector.load %arg5[%c0_12, %c0_13] : memref<256x256xf32, #tpu.memory_space<vmem>>, vector<256x256xf32>
      tpu.vector_store %arg5[%c0_12, %c0_13], %12 {strides = array<i32>} : memref<256x256xf32, #tpu.memory_space<vmem>>, vector<256x256xf32>,
    } else {
    }
    return
  }
  func.func @transform_0(%arg0: i32, %arg1: i32, %arg2: i32) -> (i32, i32) {
    %c0_i32 = arith.constant 0 : i32
    return %arg0, %arg2 : i32, i32
  }
  func.func @transform_1(%arg0: i32, %arg1: i32, %arg2: i32) -> (i32, i32) {
    %c0_i32 = arith.constant 0 : i32
    return %arg1, %arg2 : i32, i32
  }
  func.func @transform_2(%arg0: i32, %arg1: i32, %arg2: i32) -> (i32, i32) {
    %c0_i32 = arith.constant 0 : i32
    return %arg0, %arg1 : i32, i32
  }
}

</mosaic_0001>

<bundles_post_ra>
// kernel: tpu_custom_call.1
= control target key start
LH: loop header
LB: loop body
LE: loop exit
PB: predicated region body
PF: predicated region fallthrough
CT: control target
= control target key end

     0   :  { %s3419_s0 = inlined_call_operand.hbm [shape: f32[512,512], index: 0, kind: input, shape index: {}]   ;;  %s3420_s1 = inlined_call_operand.hbm [shape: f32[1024,512], index: 1, kind: input, shape index: {}]   ;;  %s3421_s2 = inlined_call_operand.hbm [shape: f32[512,1024], index: 2, kind: output, shape index: {}]  }
   0x1   :  { %3506 = sst [smem:[#allocation94_spill]] %s3419_s0 }
   0x2   :  { %3507 = sst [smem:[#allocation95_spill]] %s3421_s2 }
   0x3   :  { %7 = vsyncpa [#allocation4], 0 }
   0x4   :  { %9 = vsyncpa [#allocation4 + $0x1], 0 }
   0x5   :  { %10 = vsyncpa [#allocation7], 0 }
   0x6   :  { %12 = vsyncpa [#allocation7 + $0x1], 0 }
   0x7   :  { %13 = vsyncpa [#allocation5], 0 }
   0x8   :  { %15 = vsyncpa [#allocation5 + $0x1], 0  ;;  %s2332_s9 = smov 0   ;;  %s2334_s10 = smov 0  }
   0x9   :  { %s2336_s11 = smov 0   ;;  %s2338_s12 = smov 0  }
   0xa   :  { %s2340_s13 = smov 0   ;;  %s2342_s14 = smov 0  }
   0xb   :  { %s2344_s15 = smov 0   ;;  %s2346_s16 = smov 0  }
   0xc   :  { %s2348_s17 = smov 0   ;;  %s2350_s18 = smov 0  }
   0xd   :  { %s2352_s19 = smov 0   ;;  %s2354_s20 = smov 0  }
   0xe   :  { %s2356_s21 = smov 0   ;;  %s2358_s22 = smov 0  }
   0xf LB: > { %3508 = sst [smem:[#allocation12_spill]] %s2298_s19  ;;  %s1932_s23 = sadd.s32 4294967295, %s2310_s22   ;;  %s2310_s22 = sphi %s2358_s22, %s21_s22   ;;  %s2306_s21 = sphi %s2356_s21, %s3684_s21   ;;  %s2302_s20 = sphi %s2354_s20, %s3695_s20   ;;  %s2298_s19 = sphi %s2352_s19, %s3682_s19   ;;  %s2294_s18 = sphi %s2350_s18, %s3694_s18   ;;  %s2290_s17 = sphi %s2348_s17, %s3693_s17   ;;  %s2286_s16 = sphi %s2346_s16, %s3692_s16   ;;  %s2282_s15 = sphi %s2344_s15, %s3691_s15   ;;  %s2278_s14 = sphi %s2342_s14, %s3690_s14   ;;  %s2274_s13 = sphi %s2340_s13, %s3689_s13   ;;  %s2270_s12 = sphi %s2338_s12, %s3688_s12   ;;  %s2266_s11 = sphi %s2336_s11, %s3687_s11   ;;  %s2262_s10 = sphi %s2334_s10, %s3686_s10   ;;  %s2258_s9 = sphi %s2332_s9, %s3685_s9  }
  0x10   : > { %3509 = sst [smem:[#allocation13_spill]] %s2306_s21  ;;  %s40_s24 = sadd.s32 1, %s2306_s21 }
  0x11   : > { %s49_s25 = sadd.s32 1, %s2290_s17  ;;  %p56_p0 = scmp.ne.s32.totalorder %s2290_s17, %s2286_s16 }
  0x12   : > { %p57_p1 = scmp.eq.s32.totalorder %s2310_s22, 0  ;;  %p62_p2 = scmp.ne.s32.totalorder %s2286_s16, %s2282_s15 }
  0x13   : > { %p2407_p3 = scmp.eq.s32.totalorder %s1932_s23, 0  ;;  %p2411_p4 = scmp.eq.s32.totalorder %s1932_s23, 7 }
  0x14   : > { %p58_p5 = por %p57_p1, %p56_p0  ;;  %p1977_p7 = scmp.lt.s32.totalorder %s2310_s22, 8 }
  0x15   : > { %p2419_p6 = por %p2407_p3, %p62_p2  ;;  %s142_s29 = sand.u32 1, %s2290_s17  }
  0x16   : > { %s1956_s30 = sshll.u32 %s2306_s21, 10  ;;  %s1936_s3 = sshll.u32 %s142_s29, 10 }
  0x17   : > { %s3513_s0 = sld [smem:[#allocation94_spill]]  ;;  %s146_s8 = scalar_lea.vmem [#allocation3], %s1936_s3 }
  0x18   : > { %s157_s15 = sshll.u32 %s146_s8, 4  ;;  %p1967_p8 = pnand %p1977_p7, %p58_p5  ;;  %s158_s15 = int_to_ptr.vmem [resolvable:$true] %s157_s15 }
  0x19   : > { %p1944_p9 = scmp.ge.s32.totalorder %s2310_s22, 1  ;;  %p190_p10 = scmp.lt.s32.totalorder %s2310_s22, 9 }
  0x1a   : > { %s143_s23 = scalar_lea.sflag [#allocation4], %s142_s29  ;;  %s3423_s4 = smov 32  }
  0x1b   : > { %p2436_p11 = pnand %p1944_p9, %p190_p10  ;;  %s1933_s5 = sadd.s32 4294967294, %s2310_s22  }
  0x1c   : > { %s77_s8 = sadd.s32 1, %s2278_s14  ;;  %p84_p13 = scmp.ne.s32.totalorder %s2278_s14, %s2274_s13 }
  0x1d   : > { %s154_s6 = scalar_lea.hbm %s3513_s0, %s1956_s30  ;;  %s3422_s30 = smov 512  }
  0x1e   : > { %s155_s7 = sshll.u32 %s154_s6, 4  ;;  %s36_s6 = sadd.s32 1, %s2302_s20  ;;  %s156_s7 = int_to_ptr.hbm [resolvable:$true] %s155_s7 }
  0x1f   : > { %1969 = dma.hbm_to_vmem [thread:$0]  (!%p1967_p8), %s156_s7, 16384, %s158_s15, %s143_s23, %s3422_s30, %s3422_s30, %s3423_s4  }
  0x20   : > { %p38_p12 = scmp.ge.s32.totalorder %s36_s6, 4  ;;  %p90_p0 = scmp.ne.s32.totalorder %s2274_s13, %s2270_s12 }
  0x21   : > { %s105_s29 = sadd.s32 1, %s2266_s11  ;;  %p2457_p2 = por %p84_p13, %p57_p1 }
  0x22   : > { %s3697_s6 = smov (%p38_p12, %s36_s6), 0  ;;  %s3699_s24 = smov (!%p38_p12, %s40_s24), %s2306_s21 }
  0x23   : > { %3515 = sst [smem:[#allocation14_spill]] %s3697_s6  ;;  %s72_s7 = ssub.s32 %s2302_s20, %s3697_s6 }
  0x24   : > { %p42_p5 = scmp.ge.s32.totalorder %s3699_s24, 2  ;;  %p75_p8 = scmp.eq.s32.totalorder %s72_s7, 0 }
  0x25   : > { %p2463_p9 = por %p90_p0, %p2407_p3  ;;  %p115_p10 = scmp.ne.s32.totalorder %s2266_s11, %s2262_s10 }
  0x26   : > { %s3701_s24 = smov (%p42_p5, %s3699_s24), 0  ;;  %p121_p13 = scmp.ne.s32.totalorder %s2262_s10, %s2258_s9 }
  0x27   : > { %3518 = sst [smem:[#allocation15_spill]] %s3701_s24  ;;  %s44_s30 = ssub.s32 %s2306_s21, %s3701_s24 }
  0x28   : > { %s2472_s23 = scalar_select %p75_p8, %s2278_s14, %s77_s8  }
  0x29   : > { %p2478_p1 = por %p2411_p4, %p115_p10  ;;  %p47_p12 = scmp.eq.s32.totalorder %s44_s30, 0 }
  0x2a   : > { %3519 = sst [smem:[#allocation16_spill]] %s2472_s23  ;;  %s102_s26 = sor.u32 %s72_s7, %s44_s30 }
  0x2b   : > { %s3520_s4 = scalar_select %p2478_p1, 1, 0 }
  0x2c   : > { %p103_p3 = scmp.eq.s32.totalorder %s102_s26, 0  ;;  %p122_p0 = scmp.eq.s32.totalorder %s1933_s5, 7 }
  0x2d   : > { %3521 = sst [smem:[#allocation17_spill]] %s3520_s4  ;;  %s167_s8 = sand.u32 1, %s2278_s14  }
  0x2e   : > { %s2487_s0 = scalar_select %p47_p12, %s2290_s17, %s49_s25  }
  0x2f   : > { %s2490_s6 = scalar_select %p103_p3, %s2266_s11, %s105_s29  }
  0x30   : > { %s1940_s23 = sshll.u32 %s167_s8, 10  ;;  %p2493_p5 = por %p122_p0, %p121_p13 }
  0x31   : > { %s1958_s24 = sshll.u32 %s2302_s20, 10  ;;  %s171_s21 = scalar_lea.vmem [#allocation6], %s1940_s23 }
  0x32   : > { %s182_s4 = sshll.u32 %s171_s21, 4  ;;  %s179_s30 = scalar_lea.hbm %s3420_s1, %s1958_s24  ;;  %s183_s4 = int_to_ptr.vmem [resolvable:$true] %s182_s4 }
  0x33   : > { %s180_s7 = sshll.u32 %s179_s30, 4  ;;  %p1970_p4 = pnand %p1977_p7, %p2457_p2  ;;  %s181_s7 = int_to_ptr.hbm [resolvable:$true] %s180_s7 }
  0x34   : > { %s168_s25 = scalar_lea.sflag [#allocation7], %s167_s8  ;;  %s3523_s5 = smov 32  }
  0x35   : > { %s3524_s29 = smov 512   ;;  %194 = sbr.rel (%p2436_p11) target bundleno = 775 (0x307), region = 28 }
  0x36   : > { %1972 = dma.hbm_to_vmem [thread:$0]  (!%p1970_p4), %s181_s7, 16384, %s183_s4, %s168_s25, %s3524_s29, %s3524_s29, %s3523_s5  }
  0x3a   : > { %s196_s21 = sand.u32 1, %s2286_s16  }
  0x3b   : > { %s1945_s23 = sshll.u32 %s196_s21, 10  ;;  %s197_s2 = scalar_lea.sflag [#allocation4], %s196_s21 }
  0x3c   : > { %s2511_s19 = scalar_lea.vmem [#allocation3], %s1945_s23 }
  0x3d   : > { %2245 = dma.done.wait (%p2419_p6), %s197_s2, 16384  }
  0x3e   : > { %2247 = vsyncadd (%p2419_p6), %s197_s2, 4294950912  ;;  %s206_s24 = sand.u32 1, %s2274_s13  }
  0x3f   : > { %s1946_s15 = sshll.u32 %s206_s24, 10  ;;  %s207_s4 = scalar_lea.sflag [#allocation7], %s206_s24 }
  0x40   : > { %s2518_s26 = scalar_lea.vmem [#allocation6], %s1946_s15 }
  0x41   : > { %2249 = dma.done.wait (%p2463_p9), %s207_s4, 16384  }
  0x42   : > { %2251 = vsyncadd (%p2463_p9), %s207_s4, 4294950912  ;;  %v565_v0 = vld [vmem:[%s2518_s26 + $0x1f0] sm:$0xff]  ;;  %v566_v1 = vld [vmem:[%s2518_s26 + $0x1f8] sm:$0xff]  ;;  %s234_s28 = sand.u32 1, %s2262_s10   ;;  %s3677_s8 = sld [smem:[#allocation12_spill]] }
  0x43   : > { %v563_v2 = vld [vmem:[%s2518_s26 + $0x1e0] sm:$0xff]  ;;  %857 = vmatpush.xpose.msra.mxu2 %v565_v0  ;;  %970 = vmatpush.xpose.msra.mxu3 %v566_v1  ;;  %v564_v3 = vld [vmem:[%s2518_s26 + $0x1e8] sm:$0xff]  ;;  %v561_v4 = vld [vmem:[%s2518_s26 + $0x1d0] sm:$0xff]  ;;  %s1947_s3 = sshll.u32 %s234_s28, 9  ;;  %s1950_s30 = sshll.u32 %s2294_s18, 1 }
  0x44   : > { %631 = vmatpush.xpose.msra.mxu0 %v563_v2  ;;  %744 = vmatpush.xpose.msra.mxu1 %v564_v3  ;;  %v562_v5 = vld [vmem:[%s2518_s26 + $0x1d8] sm:$0xff]  ;;  %v559_v6 = vld [vmem:[%s2518_s26 + $0x1c0] sm:$0xff]  ;;  %v560_v7 = vld [vmem:[%s2518_s26 + $0x1c8] sm:$0xff]  ;;  %s2907_s12 = scalar_lea.vmem [#allocation8], %s1947_s3  ;;  %s3678_s23 = sld [smem:[#allocation95_spill]] }
  0x45   : > { %v557_v8 = vld [vmem:[%s2518_s26 + $0x1b0] sm:$0xff]  ;;  %v558_v9 = vld [vmem:[%s2518_s26 + $0x1b8] sm:$0xff]  ;;  %v555_v10 = vld [vmem:[%s2518_s26 + $0x1a0] sm:$0xff]  ;;  %s1795_s15 = scalar_lea.sflag [#allocation5], %s234_s28 }
  0x46   : > { %v556_v11 = vld [vmem:[%s2518_s26 + $0x1a8] sm:$0xff]  ;;  %v553_v12 = vld [vmem:[%s2518_s26 + $0x190] sm:$0xff]  ;;  %v554_v13 = vld [vmem:[%s2518_s26 + $0x198] sm:$0xff] }
  0x47   : > { %858 = vmatpush.xpose.msra.mxu2 %v561_v4  ;;  %971 = vmatpush.xpose.msra.mxu3 %v562_v5  ;;  %v551_v14 = vld [vmem:[%s2518_s26 + $0x180] sm:$0xff]  ;;  %v552_v15 = vld [vmem:[%s2518_s26 + $0x188] sm:$0xff]  ;;  %v549_v16 = vld [vmem:[%s2518_s26 + $0x170] sm:$0xff] }
  0x48   : > { %632 = vmatpush.xpose.msra.mxu0 %v559_v6  ;;  %745 = vmatpush.xpose.msra.mxu1 %v560_v7  ;;  %v550_v17 = vld [vmem:[%s2518_s26 + $0x178] sm:$0xff]  ;;  %v547_v18 = vld [vmem:[%s2518_s26 + $0x160] sm:$0xff]  ;;  %v548_v19 = vld [vmem:[%s2518_s26 + $0x168] sm:$0xff]  ;;  %s1959_s7 = sshll.u32 %s3677_s8, 8 }
  0x49   : > { %v545_v20 = vld [vmem:[%s2518_s26 + $0x150] sm:$0xff]  ;;  %v546_v21 = vld [vmem:[%s2518_s26 + $0x158] sm:$0xff]  ;;  %v543_v22 = vld [vmem:[%s2518_s26 + $0x140] sm:$0xff]  ;;  %s1807_s25 = sadd.s32 %s1959_s7, %s1950_s30 }
  0x4a   : > { %v544_v23 = vld [vmem:[%s2518_s26 + $0x148] sm:$0xff]  ;;  %v541_v24 = vld [vmem:[%s2518_s26 + $0x130] sm:$0xff]  ;;  %v542_v25 = vld [vmem:[%s2518_s26 + $0x138] sm:$0xff]  ;;  %s1952_s5 = sshll.u32 %s1807_s25, 3  ;;  %s2180_s30 = scalar_lea.hbm %s3678_s23, 4096 }
  0x4b   : > { %859 = vmatpush.xpose.msra.mxu2 %v557_v8  ;;  %972 = vmatpush.xpose.msra.mxu3 %v558_v9  ;;  %v539_v26 = vld [vmem:[%s2518_s26 + $0x120] sm:$0xff]  ;;  %v540_v27 = vld [vmem:[%s2518_s26 + $0x128] sm:$0xff]  ;;  %v537_v28 = vld [vmem:[%s2518_s26 + $0x110] sm:$0xff]  ;;  %s1809_s2 = scalar_lea.hbm %s3678_s23, %s1952_s5 }
  0x4c   : > { %633 = vmatpush.xpose.msra.mxu0 %v555_v10  ;;  %746 = vmatpush.xpose.msra.mxu1 %v556_v11  ;;  %v538_v29 = vld [vmem:[%s2518_s26 + $0x118] sm:$0xff]  ;;  %v535_v30 = vld [vmem:[%s2518_s26 + $0x100] sm:$0xff]  ;;  %v536_v31 = vld [vmem:[%s2518_s26 + $0x108] sm:$0xff]  ;;  %s1812_s24 = sshll.u32 %s1809_s2, 4  ;;  %s1813_s24 = int_to_ptr.hbm [resolvable:$true] %s1812_s24 }
  0x4d   : > { %v533_v32 = vld [vmem:[%s2518_s26 + $0xf0] sm:$0xff]  ;;  %v534_v33 = vld [vmem:[%s2518_s26 + $0xf8] sm:$0xff]  ;;  %v531_v34 = vld [vmem:[%s2518_s26 + $0xe0] sm:$0xff]  ;;  %s2174_s4 = sshra.s32 %s1813_s24, 4  ;;  %s2175_s4 = int_to_ptr.hbm [resolvable:$true] %s2174_s4 }
  0x4e   : > { %v532_v35 = vld [vmem:[%s2518_s26 + $0xe8] sm:$0xff]  ;;  %v529_v36 = vld [vmem:[%s2518_s26 + $0xd0] sm:$0xff]  ;;  %v530_v37 = vld [vmem:[%s2518_s26 + $0xd8] sm:$0xff]  ;;  %p2181_p2 = scmp.lt.s32.totalorder %s2175_s4, %s3678_s23 }
  0x4f   : > { %860 = vmatpush.xpose.msra.mxu2 %v553_v12  ;;  %973 = vmatpush.xpose.msra.mxu3 %v554_v13  ;;  %v527_v38 = vld [vmem:[%s2518_s26 + $0xc0] sm:$0xff]  ;;  %v528_v39 = vld [vmem:[%s2518_s26 + $0xc8] sm:$0xff]  ;;  %v525_v40 = vld [vmem:[%s2518_s26 + $0xb0] sm:$0xff] }
  0x50   : > { %634 = vmatpush.xpose.msra.mxu0 %v551_v14  ;;  %747 = vmatpush.xpose.msra.mxu1 %v552_v15  ;;  %v526_v41 = vld [vmem:[%s2518_s26 + $0xb8] sm:$0xff]  ;;  %v523_v42 = vld [vmem:[%s2518_s26 + $0xa0] sm:$0xff]  ;;  %v524_v43 = vld [vmem:[%s2518_s26 + $0xa8] sm:$0xff] }
  0x51   : > { %v521_v44 = vld [vmem:[%s2518_s26 + $0x90] sm:$0xff]  ;;  %v522_v45 = vld [vmem:[%s2518_s26 + $0x98] sm:$0xff]  ;;  %v519_v46 = vld [vmem:[%s2518_s26 + $0x80] sm:$0xff] }
  0x52   : > { %v520_v47 = vld [vmem:[%s2518_s26 + $0x88] sm:$0xff]  ;;  %v517_v48 = vld [vmem:[%s2518_s26 + $0x70] sm:$0xff]  ;;  %v518_v49 = vld [vmem:[%s2518_s26 + $0x78] sm:$0xff] }
  0x53   : > { %861 = vmatpush.xpose.msra.mxu2 %v549_v16  ;;  %974 = vmatpush.xpose.msra.mxu3 %v550_v17  ;;  %v515_v50 = vld [vmem:[%s2518_s26 + $0x60] sm:$0xff]  ;;  %v516_v51 = vld [vmem:[%s2518_s26 + $0x68] sm:$0xff]  ;;  %v513_v52 = vld [vmem:[%s2518_s26 + $0x50] sm:$0xff] }
  0x54   : > { %635 = vmatpush.xpose.msra.mxu0 %v547_v18  ;;  %748 = vmatpush.xpose.msra.mxu1 %v548_v19  ;;  %v514_v53 = vld [vmem:[%s2518_s26 + $0x58] sm:$0xff]  ;;  %v511_v54 = vld [vmem:[%s2518_s26 + $0x40] sm:$0xff]  ;;  %v512_v55 = vld [vmem:[%s2518_s26 + $0x48] sm:$0xff] }
  0x55   : > { %v509_v56 = vld [vmem:[%s2518_s26 + $0x30] sm:$0xff]  ;;  %v510_v57 = vld [vmem:[%s2518_s26 + $0x38] sm:$0xff]  ;;  %v507_v58 = vld [vmem:[%s2518_s26 + $0x20] sm:$0xff] }
  0x56   : > { %v508_v59 = vld [vmem:[%s2518_s26 + $0x28] sm:$0xff]  ;;  %v505_v60 = vld [vmem:[%s2518_s26 + $0x10] sm:$0xff]  ;;  %v506_v61 = vld [vmem:[%s2518_s26 + $0x18] sm:$0xff] }
  0x57   : > { %862 = vmatpush.xpose.msra.mxu2 %v545_v20  ;;  %975 = vmatpush.xpose.msra.mxu3 %v546_v21  ;;  %v629_v62 = vld [vmem:[%s2518_s26 + $0x3f0] sm:$0xff]  ;;  %v503_v63 = vld [vmem:[%s2518_s26] sm:$0xff]  ;;  %v504_v0 = vld [vmem:[%s2518_s26 + $0x8] sm:$0xff] }
  0x58   : > { %636 = vmatpush.xpose.msra.mxu0 %v543_v22  ;;  %749 = vmatpush.xpose.msra.mxu1 %v544_v23  ;;  %v630_v1 = vld [vmem:[%s2518_s26 + $0x3f8] sm:$0xff]  ;;  %v377_v2 = vld [vmem:[%s2511_s19 + $0x10] sm:$0xff]  ;;  %v375_v4 = vld [vmem:[%s2511_s19] sm:$0xff] }
  0x59   : > { %v378_v3 = vld [vmem:[%s2511_s19 + $0x18] sm:$0xff]  ;;  %v628_v5 = vld [vmem:[%s2518_s26 + $0x3e8] sm:$0xff]  ;;  %v627_v7 = vld [vmem:[%s2518_s26 + $0x3e0] sm:$0xff] }
  0x5a   : > { %v376_v6 = vld [vmem:[%s2511_s19 + $0x8] sm:$0xff]  ;;  %v625_v8 = vld [vmem:[%s2518_s26 + $0x3d0] sm:$0xff]  ;;  %v626_v9 = vld [vmem:[%s2518_s26 + $0x3d8] sm:$0xff] }
  0x5b   : > { %863 = vmatpush.xpose.msra.mxu2 %v541_v24  ;;  %976 = vmatpush.xpose.msra.mxu3 %v542_v25  ;;  %v624_v10 = vld [vmem:[%s2518_s26 + $0x3c8] sm:$0xff]  ;;  %v623_v11 = vld [vmem:[%s2518_s26 + $0x3c0] sm:$0xff]  ;;  %v621_v12 = vld [vmem:[%s2518_s26 + $0x3b0] sm:$0xff] }
  0x5c   : > { %637 = vmatpush.xpose.msra.mxu0 %v539_v26  ;;  %750 = vmatpush.xpose.msra.mxu1 %v540_v27  ;;  %v622_v13 = vld [vmem:[%s2518_s26 + $0x3b8] sm:$0xff]  ;;  %v2603_v14 = vld [vmem:[%s2511_s19 + $0x30] sm:$0xff]  ;;  %v2609_v16 = vld [vmem:[%s2511_s19 + $0x20] sm:$0xff] }
  0x5d   : > { %v2606_v15 = vld [vmem:[%s2511_s19 + $0x38] sm:$0xff]  ;;  %v620_v17 = vld [vmem:[%s2518_s26 + $0x3a8] sm:$0xff]  ;;  %v619_v19 = vld [vmem:[%s2518_s26 + $0x3a0] sm:$0xff] }
  0x5e   : > { %v2613_v18 = vld [vmem:[%s2511_s19 + $0x28] sm:$0xff]  ;;  %v2621_v20 = vld [vmem:[%s2511_s19 + $0x50] sm:$0xff]  ;;  %v2624_v21 = vld [vmem:[%s2511_s19 + $0x58] sm:$0xff] }
  0x5f   : > { %864 = vmatpush.xpose.msra.mxu2 %v537_v28  ;;  %977 = vmatpush.xpose.msra.mxu3 %v538_v29  ;;  %v2627_v22 = vld [vmem:[%s2511_s19 + $0x40] sm:$0xff]  ;;  %v2630_v23 = vld [vmem:[%s2511_s19 + $0x48] sm:$0xff]  ;;  %v617_v24 = vld [vmem:[%s2518_s26 + $0x390] sm:$0xff] }
  0x60   : > { %638 = vmatpush.xpose.msra.mxu0 %v535_v30  ;;  %751 = vmatpush.xpose.msra.mxu1 %v536_v31  ;;  %v618_v25 = vld [vmem:[%s2518_s26 + $0x398] sm:$0xff]  ;;  %v615_v26 = vld [vmem:[%s2518_s26 + $0x380] sm:$0xff]  ;;  %v616_v27 = vld [vmem:[%s2518_s26 + $0x388] sm:$0xff] }
  0x61   : > { %v2641_v28 = vld [vmem:[%s2511_s19 + $0x70] sm:$0xff]  ;;  %v2644_v29 = vld [vmem:[%s2511_s19 + $0x78] sm:$0xff]  ;;  %v2647_v30 = vld [vmem:[%s2511_s19 + $0x60] sm:$0xff] }
  0x62   : > { %v2650_v31 = vld [vmem:[%s2511_s19 + $0x68] sm:$0xff] }
  0x63   : > { %865 = vmatpush.xpose.msra.mxu2 %v533_v32  ;;  %978 = vmatpush.xpose.msra.mxu3 %v534_v33  ;;  %v2657_v32 = vld [vmem:[%s2511_s19 + $0x90] sm:$0xff]  ;;  %v2660_v33 = vld [vmem:[%s2511_s19 + $0x98] sm:$0xff] }
  0x64   : > { %639 = vmatpush.xpose.msra.mxu0 %v531_v34  ;;  %752 = vmatpush.xpose.msra.mxu1 %v532_v35  ;;  %v2663_v34 = vld [vmem:[%s2511_s19 + $0x80] sm:$0xff]  ;;  %v2666_v35 = vld [vmem:[%s2511_s19 + $0x88] sm:$0xff] }
  0x67   : > { %866 = vmatpush.xpose.msra.mxu2 %v529_v36  ;;  %979 = vmatpush.xpose.msra.mxu3 %v530_v37  ;;  %v613_v36 = vld [vmem:[%s2518_s26 + $0x370] sm:$0xff]  ;;  %v614_v37 = vld [vmem:[%s2518_s26 + $0x378] sm:$0xff] }
  0x68   : > { %640 = vmatpush.xpose.msra.mxu0 %v527_v38  ;;  %753 = vmatpush.xpose.msra.mxu1 %v528_v39  ;;  %v611_v38 = vld [vmem:[%s2518_s26 + $0x360] sm:$0xff]  ;;  %v612_v39 = vld [vmem:[%s2518_s26 + $0x368] sm:$0xff] }
  0x6b   : > { %867 = vmatpush.xpose.msra.mxu2 %v525_v40  ;;  %980 = vmatpush.xpose.msra.mxu3 %v526_v41  ;;  %v2677_v40 = vld [vmem:[%s2511_s19 + $0xb0] sm:$0xff]  ;;  %v2680_v41 = vld [vmem:[%s2511_s19 + $0xb8] sm:$0xff] }
  0x6c   : > { %641 = vmatpush.xpose.msra.mxu0 %v523_v42  ;;  %754 = vmatpush.xpose.msra.mxu1 %v524_v43  ;;  %v2683_v42 = vld [vmem:[%s2511_s19 + $0xa0] sm:$0xff]  ;;  %v2686_v43 = vld [vmem:[%s2511_s19 + $0xa8] sm:$0xff] }
  0x6f   : > { %868 = vmatpush.xpose.msra.mxu2 %v521_v44  ;;  %981 = vmatpush.xpose.msra.mxu3 %v522_v45  ;;  %v2693_v44 = vld [vmem:[%s2511_s19 + $0xd0] sm:$0xff]  ;;  %v2696_v45 = vld [vmem:[%s2511_s19 + $0xd8] sm:$0xff] }
  0x70   : > { %642 = vmatpush.xpose.msra.mxu0 %v519_v46  ;;  %755 = vmatpush.xpose.msra.mxu1 %v520_v47  ;;  %v2699_v46 = vld [vmem:[%s2511_s19 + $0xc0] sm:$0xff]  ;;  %v2702_v47 = vld [vmem:[%s2511_s19 + $0xc8] sm:$0xff] }
  0x73   : > { %869 = vmatpush.xpose.msra.mxu2 %v517_v48  ;;  %982 = vmatpush.xpose.msra.mxu3 %v518_v49  ;;  %v609_v48 = vld [vmem:[%s2518_s26 + $0x350] sm:$0xff]  ;;  %v610_v49 = vld [vmem:[%s2518_s26 + $0x358] sm:$0xff] }
  0x74   : > { %643 = vmatpush.xpose.msra.mxu0 %v515_v50  ;;  %756 = vmatpush.xpose.msra.mxu1 %v516_v51  ;;  %v607_v50 = vld [vmem:[%s2518_s26 + $0x340] sm:$0xff]  ;;  %v608_v51 = vld [vmem:[%s2518_s26 + $0x348] sm:$0xff] }
  0x77   : > { %870 = vmatpush.xpose.msra.mxu2 %v513_v52  ;;  %983 = vmatpush.xpose.msra.mxu3 %v514_v53  ;;  %v2713_v52 = vld [vmem:[%s2511_s19 + $0xf0] sm:$0xff]  ;;  %v2716_v53 = vld [vmem:[%s2511_s19 + $0xf8] sm:$0xff] }
  0x78   : > { %644 = vmatpush.xpose.msra.mxu0 %v511_v54  ;;  %757 = vmatpush.xpose.msra.mxu1 %v512_v55  ;;  %v2719_v54 = vld [vmem:[%s2511_s19 + $0xe0] sm:$0xff]  ;;  %v2722_v55 = vld [vmem:[%s2511_s19 + $0xe8] sm:$0xff] }
  0x7b   : > { %871 = vmatpush.xpose.msra.mxu2 %v509_v56  ;;  %984 = vmatpush.xpose.msra.mxu3 %v510_v57  ;;  %v2729_v56 = vld [vmem:[%s2511_s19 + $0x110] sm:$0xff]  ;;  %v2732_v57 = vld [vmem:[%s2511_s19 + $0x118] sm:$0xff] }
  0x7c   : > { %645 = vmatpush.xpose.msra.mxu0 %v507_v58  ;;  %758 = vmatpush.xpose.msra.mxu1 %v508_v59  ;;  %v2735_v58 = vld [vmem:[%s2511_s19 + $0x100] sm:$0xff]  ;;  %v2738_v59 = vld [vmem:[%s2511_s19 + $0x108] sm:$0xff] }
  0x7f   : > { %872 = vmatpush.xpose.msra.mxu2 %v505_v60  ;;  %985 = vmatpush.xpose.msra.mxu3 %v506_v61  ;;  %v605_v60 = vld [vmem:[%s2518_s26 + $0x330] sm:$0xff]  ;;  %v606_v61 = vld [vmem:[%s2518_s26 + $0x338] sm:$0xff] }
  0x80   : > { %646 = vmatpush.xpose.msra.mxu0 %v503_v63  ;;  %759 = vmatpush.xpose.msra.mxu1 %v504_v0  ;;  %v604_v63 = vld [vmem:[%s2518_s26 + $0x328] sm:$0xff]  ;;  %v2749_v0 = vld [vmem:[%s2511_s19 + $0x130] sm:$0xff] }
  0x82   : > { %873 = vmatmul.f32.vlgmr.msra.gmra.mxu2 %v377_v2  ;;  %986 = vmatmul.f32.vlgmr.msra.gmra.mxu3 %v378_v3  ;;  %v2755_v2 = vld [vmem:[%s2511_s19 + $0x120] sm:$0xff]  ;;  %v2758_v3 = vld [vmem:[%s2511_s19 + $0x128] sm:$0xff] }
  0x83   : > { %1309 = vmatpush.xpose.msrb.mxu2 %v629_v62  ;;  %1422 = vmatpush.xpose.msrb.mxu3 %v630_v1  ;;  %v603_v62 = vld [vmem:[%s2518_s26 + $0x320] sm:$0xff]  ;;  %v2752_v1 = vld [vmem:[%s2511_s19 + $0x138] sm:$0xff] }
  0x84   : > { %647 = vmatmul.f32.vlgmr.msra.gmra.mxu0 %v375_v4  ;;  %1196 = vmatpush.xpose.msrb.mxu1 %v628_v5  ;;  %v2765_v4 = vld [vmem:[%s2511_s19 + $0x150] sm:$0xff]  ;;  %v2768_v5 = vld [vmem:[%s2511_s19 + $0x158] sm:$0xff] }
  0x85   : > { %760 = vmatmul.f32.vlgmr.msra.gmra.mxu1 %v376_v6  ;;  %1083 = vmatpush.xpose.msrb.mxu0 %v627_v7  ;;  %v2771_v6 = vld [vmem:[%s2511_s19 + $0x140] sm:$0xff]  ;;  %v2774_v7 = vld [vmem:[%s2511_s19 + $0x148] sm:$0xff] }
  0x87   : > { %1310 = vmatpush.xpose.msrb.mxu2 %v625_v8  ;;  %1423 = vmatpush.xpose.msrb.mxu3 %v626_v9  ;;  %v601_v8 = vld [vmem:[%s2518_s26 + $0x310] sm:$0xff]  ;;  %v602_v9 = vld [vmem:[%s2518_s26 + $0x318] sm:$0xff] }
  0x88   : > { %1197 = vmatpush.xpose.msrb.mxu1 %v624_v10  ;;  %v599_v10 = vld [vmem:[%s2518_s26 + $0x300] sm:$0xff] }
  0x89   : > { %1084 = vmatpush.xpose.msrb.mxu0 %v623_v11  ;;  %v600_v11 = vld [vmem:[%s2518_s26 + $0x308] sm:$0xff] }
  0x8a   : > { %876 = vmatmul.f32.gmra.mxu2 %v2603_v14  ;;  %989 = vmatmul.f32.gmra.mxu3 %v2606_v15 }
  0x8b   : > { %1311 = vmatpush.xpose.msrb.mxu2 %v621_v12  ;;  %1424 = vmatpush.xpose.msrb.mxu3 %v622_v13  ;;  %v2785_v12 = vld [vmem:[%s2511_s19 + $0x170] sm:$0xff]  ;;  %v2788_v13 = vld [vmem:[%s2511_s19 + $0x178] sm:$0xff] }
  0x8c   : > { %650 = vmatmul.f32.gmra.mxu0 %v2609_v16  ;;  %1198 = vmatpush.xpose.msrb.mxu1 %v620_v17  ;;  %v2791_v17 = vld [vmem:[%s2511_s19 + $0x160] sm:$0xff] }
  0x8d   : > { %763 = vmatmul.f32.gmra.mxu1 %v2613_v18  ;;  %1085 = vmatpush.xpose.msrb.mxu0 %v619_v19  ;;  %v2794_v19 = vld [vmem:[%s2511_s19 + $0x168] sm:$0xff] }
  0x8f   : > { %1312 = vmatpush.xpose.msrb.mxu2 %v617_v24  ;;  %1425 = vmatpush.xpose.msrb.mxu3 %v618_v25  ;;  %v2801_v24 = vld [vmem:[%s2511_s19 + $0x190] sm:$0xff]  ;;  %v2804_v25 = vld [vmem:[%s2511_s19 + $0x198] sm:$0xff] }
  0x90   : > { %1199 = vmatpush.xpose.msrb.mxu1 %v616_v27  ;;  %v2810_v27 = vld [vmem:[%s2511_s19 + $0x188] sm:$0xff] }
  0x91   : > { %1086 = vmatpush.xpose.msrb.mxu0 %v615_v26  ;;  %v2807_v26 = vld [vmem:[%s2511_s19 + $0x180] sm:$0xff] }
  0x92   : > { %879 = vmatmul.f32.gmra.mxu2 %v2621_v20  ;;  %992 = vmatmul.f32.gmra.mxu3 %v2624_v21 }
  0x93   : > { %1313 = vmatpush.xpose.msrb.mxu2 %v613_v36  ;;  %1426 = vmatpush.xpose.msrb.mxu3 %v614_v37  ;;  %v597_v36 = vld [vmem:[%s2518_s26 + $0x2f0] sm:$0xff]  ;;  %v598_v37 = vld [vmem:[%s2518_s26 + $0x2f8] sm:$0xff] }
  0x94   : > { %653 = vmatmul.f32.gmra.mxu0 %v2627_v22  ;;  %1200 = vmatpush.xpose.msrb.mxu1 %v612_v39  ;;  %v596_v39 = vld [vmem:[%s2518_s26 + $0x2e8] sm:$0xff] }
  0x95   : > { %766 = vmatmul.f32.gmra.mxu1 %v2630_v23  ;;  %1087 = vmatpush.xpose.msrb.mxu0 %v611_v38  ;;  %v595_v38 = vld [vmem:[%s2518_s26 + $0x2e0] sm:$0xff] }
  0x97   : > { %1314 = vmatpush.xpose.msrb.mxu2 %v609_v48  ;;  %1427 = vmatpush.xpose.msrb.mxu3 %v610_v49  ;;  %v2821_v48 = vld [vmem:[%s2511_s19 + $0x1b0] sm:$0xff]  ;;  %v2824_v49 = vld [vmem:[%s2511_s19 + $0x1b8] sm:$0xff] }
  0x98   : > { %1201 = vmatpush.xpose.msrb.mxu1 %v608_v51  ;;  %3525 = vst [vmem:[#allocation18_spill] sm:$0xff] %v2821_v48  ;;  %v2830_v51 = vld [vmem:[%s2511_s19 + $0x1a8] sm:$0xff] }
  0x99   : > { %1088 = vmatpush.xpose.msrb.mxu0 %v607_v50  ;;  %3526 = vst [vmem:[#allocation19_spill] sm:$0xff] %v2824_v49  ;;  %v2827_v50 = vld [vmem:[%s2511_s19 + $0x1a0] sm:$0xff] }
  0x9a   : > { %882 = vmatmul.f32.gmra.mxu2 %v2641_v28  ;;  %995 = vmatmul.f32.gmra.mxu3 %v2644_v29  ;;  %3527 = vst [vmem:[#allocation20_spill] sm:$0xff] %v2827_v50 }
  0x9b   : > { %1315 = vmatpush.xpose.msrb.mxu2 %v605_v60  ;;  %1428 = vmatpush.xpose.msrb.mxu3 %v606_v61  ;;  %3528 = vst [vmem:[#allocation21_spill] sm:$0xff] %v2830_v51  ;;  %v2837_v60 = vld [vmem:[%s2511_s19 + $0x1d0] sm:$0xff]  ;;  %v2840_v61 = vld [vmem:[%s2511_s19 + $0x1d8] sm:$0xff] }
  0x9c   : > { %656 = vmatmul.f32.gmra.mxu0 %v2647_v30  ;;  %1202 = vmatpush.xpose.msrb.mxu1 %v604_v63  ;;  %3529 = vst [vmem:[#allocation22_spill] sm:$0xff] %v2837_v60  ;;  %v2846_v63 = vld [vmem:[%s2511_s19 + $0x1c8] sm:$0xff] }
  0x9d   : > { %769 = vmatmul.f32.gmra.mxu1 %v2650_v31  ;;  %1089 = vmatpush.xpose.msrb.mxu0 %v603_v62  ;;  %3530 = vst [vmem:[#allocation23_spill] sm:$0xff] %v2840_v61  ;;  %v2843_v62 = vld [vmem:[%s2511_s19 + $0x1c0] sm:$0xff] }
  0x9e   : > { %3531 = vst [vmem:[#allocation24_spill] sm:$0xff] %v2843_v62 }
  0x9f   : > { %1316 = vmatpush.xpose.msrb.mxu2 %v601_v8  ;;  %1429 = vmatpush.xpose.msrb.mxu3 %v602_v9  ;;  %3532 = vst [vmem:[#allocation25_spill] sm:$0xff] %v2846_v63  ;;  %v593_v8 = vld [vmem:[%s2518_s26 + $0x2d0] sm:$0xff]  ;;  %v594_v9 = vld [vmem:[%s2518_s26 + $0x2d8] sm:$0xff] }
  0xa0   : > { %1203 = vmatpush.xpose.msrb.mxu1 %v600_v11  ;;  %v592_v11 = vld [vmem:[%s2518_s26 + $0x2c8] sm:$0xff] }
  0xa1   : > { %1090 = vmatpush.xpose.msrb.mxu0 %v599_v10  ;;  %v591_v10 = vld [vmem:[%s2518_s26 + $0x2c0] sm:$0xff] }
  0xa2   : > { %885 = vmatmul.f32.gmra.mxu2 %v2657_v32  ;;  %998 = vmatmul.f32.gmra.mxu3 %v2660_v33 }
  0xa3   : > { %1317 = vmatpush.xpose.msrb.mxu2 %v597_v36  ;;  %1430 = vmatpush.xpose.msrb.mxu3 %v598_v37  ;;  %v2857_v36 = vld [vmem:[%s2511_s19 + $0x1f0] sm:$0xff]  ;;  %v2860_v37 = vld [vmem:[%s2511_s19 + $0x1f8] sm:$0xff] }
  0xa4   : > { %659 = vmatmul.f32.gmra.mxu0 %v2663_v34  ;;  %1204 = vmatpush.xpose.msrb.mxu1 %v596_v39  ;;  %3533 = vst [vmem:[#allocation26_spill] sm:$0xff] %v2857_v36  ;;  %v2866_v39 = vld [vmem:[%s2511_s19 + $0x1e8] sm:$0xff] }
  0xa5   : > { %772 = vmatmul.f32.gmra.mxu1 %v2666_v35  ;;  %1091 = vmatpush.xpose.msrb.mxu0 %v595_v38  ;;  %3534 = vst [vmem:[#allocation27_spill] sm:$0xff] %v2860_v37  ;;  %v2863_v38 = vld [vmem:[%s2511_s19 + $0x1e0] sm:$0xff] }
  0xa6   : > { %3535 = vst [vmem:[#allocation28_spill] sm:$0xff] %v2863_v38 }
  0xa7   : > { %1318 = vmatpush.xpose.msrb.mxu2 %v593_v8  ;;  %1431 = vmatpush.xpose.msrb.mxu3 %v594_v9  ;;  %3536 = vst [vmem:[#allocation29_spill] sm:$0xff] %v2866_v39  ;;  %v2873_v8 = vld [vmem:[%s2511_s19 + $0x210] sm:$0xff]  ;;  %v2876_v9 = vld [vmem:[%s2511_s19 + $0x218] sm:$0xff] }
  0xa8   : > { %1205 = vmatpush.xpose.msrb.mxu1 %v592_v11  ;;  %3537 = vst [vmem:[#allocation30_spill] sm:$0xff] %v2873_v8  ;;  %v2879_v11 = vld [vmem:[%s2511_s19 + $0x200] sm:$0xff] }
  0xa9   : > { %1092 = vmatpush.xpose.msrb.mxu0 %v591_v10  ;;  %3538 = vst [vmem:[#allocation31_spill] sm:$0xff] %v2876_v9 }
  0xaa   : > { %888 = vmatmul.f32.gmra.mxu2 %v2677_v40  ;;  %1001 = vmatmul.f32.gmra.mxu3 %v2680_v41  ;;  %3539 = vst [vmem:[#allocation32_spill] sm:$0xff] %v2879_v11 }
  0xac   : > { %662 = vmatmul.f32.gmra.mxu0 %v2683_v42 }
  0xad   : > { %775 = vmatmul.f32.gmra.mxu1 %v2686_v43 }
  0xb2   : > { %891 = vmatmul.f32.gmra.mxu2 %v2693_v44  ;;  %1004 = vmatmul.f32.gmra.mxu3 %v2696_v45 }
  0xb4   : > { %665 = vmatmul.f32.gmra.mxu0 %v2699_v46 }
  0xb5   : > { %778 = vmatmul.f32.gmra.mxu1 %v2702_v47 }
  0xba   : > { %894 = vmatmul.f32.gmra.mxu2 %v2713_v52  ;;  %1007 = vmatmul.f32.gmra.mxu3 %v2716_v53 }
  0xbc   : > { %668 = vmatmul.f32.gmra.mxu0 %v2719_v54 }
  0xbd   : > { %781 = vmatmul.f32.gmra.mxu1 %v2722_v55 }
  0xc2   : > { %897 = vmatmul.f32.gmra.mxu2 %v2729_v56  ;;  %1010 = vmatmul.f32.gmra.mxu3 %v2732_v57 }
  0xc4   : > { %671 = vmatmul.f32.gmra.mxu0 %v2735_v58 }
  0xc5   : > { %784 = vmatmul.f32.gmra.mxu1 %v2738_v59 }
  0xca   : > { %900 = vmatmul.f32.gmra.mxu2 %v2749_v0  ;;  %1013 = vmatmul.f32.gmra.mxu3 %v2752_v1 }
  0xcc   : > { %674 = vmatmul.f32.gmra.mxu0 %v2755_v2 }
  0xcd   : > { %787 = vmatmul.f32.gmra.mxu1 %v2758_v3 }
  0xd2   : > { %903 = vmatmul.f32.gmra.mxu2 %v2765_v4  ;;  %1016 = vmatmul.f32.gmra.mxu3 %v2768_v5 }
  0xd4   : > { %677 = vmatmul.f32.gmra.mxu0 %v2771_v6 }
  0xd5   : > { %790 = vmatmul.f32.gmra.mxu1 %v2774_v7 }
  0xda   : > { %906 = vmatmul.f32.gmra.mxu2 %v2785_v12  ;;  %1019 = vmatmul.f32.gmra.mxu3 %v2788_v13 }
  0xdc   : > { %680 = vmatmul.f32.gmra.mxu0 %v2791_v17 }
  0xdd   : > { %793 = vmatmul.f32.gmra.mxu1 %v2794_v19 }
  0xe2   : > { %909 = vmatmul.f32.gmra.mxu2 %v2801_v24  ;;  %1022 = vmatmul.f32.gmra.mxu3 %v2804_v25 }
  0xe4   : > { %683 = vmatmul.f32.gmra.mxu0 %v2807_v26 }
  0xe5   : > { %796 = vmatmul.f32.gmra.mxu1 %v2810_v27 }
  0xea   : > { %912 = vmatmul.f32.gmra.mxu2 %v2821_v48  ;;  %1025 = vmatmul.f32.gmra.mxu3 %v2824_v49  ;;  %v2921_v49 = vld [vmem:[%s2511_s19 + $0x240] sm:$0xff] }
  0xeb   : > { %3547 = vst [vmem:[#allocation40_spill] sm:$0xff] %v2921_v49 }
  0xec   : > { %686 = vmatmul.f32.gmra.mxu0 %v2827_v50 }
  0xed   : > { %799 = vmatmul.f32.gmra.mxu1 %v2830_v51  ;;  %v588_v51 = vld [vmem:[%s2518_s26 + $0x2a8] sm:$0xff] }
  0xee   : > { %1206 = vmatpush.xpose.msrb.mxu1 %v588_v51 }
  0xf2   : > { %915 = vmatmul.f32.gmra.mxu2 %v2837_v60  ;;  %1028 = vmatmul.f32.gmra.mxu3 %v2840_v61 }
  0xf4   : > { %689 = vmatmul.f32.gmra.mxu0 %v2843_v62  ;;  %v2882_v62 = vld [vmem:[%s2511_s19 + $0x208] sm:$0xff] }
  0xf5   : > { %802 = vmatmul.f32.gmra.mxu1 %v2846_v63  ;;  %3540 = vst [vmem:[#allocation33_spill] sm:$0xff] %v2882_v62 }
  0xfa   : > { %918 = vmatmul.f32.gmra.mxu2 %v2857_v36  ;;  %1031 = vmatmul.f32.gmra.mxu3 %v2860_v37  ;;  %v590_v37 = vld [vmem:[%s2518_s26 + $0x2b8] sm:$0xff] }
  0xfb   : > { %1432 = vmatpush.xpose.msrb.mxu3 %v590_v37  ;;  %v2905_v37 = vld [vmem:[%s2511_s19 + $0x228] sm:$0xff] }
  0xfc   : > { %692 = vmatmul.f32.gmra.mxu0 %v2863_v38  ;;  %3544 = vst [vmem:[#allocation37_spill] sm:$0xff] %v2905_v37 }
  0xfd   : > { %805 = vmatmul.f32.gmra.mxu1 %v2866_v39  ;;  %v589_v39 = vld [vmem:[%s2518_s26 + $0x2b0] sm:$0xff] }
  0xfe   : > { %1319 = vmatpush.xpose.msrb.mxu2 %v589_v39 }
 0x101   : > { %v648_v10 = vpop.f32.mrf.mxu0 }
 0x102   : > { %v761_v63 = vpop.f32.mrf.mxu1  ;;  %921 = vmatmul.f32.gmra.mxu2 %v2873_v8  ;;  %1034 = vmatmul.f32.gmra.mxu3 %v2876_v9  ;;  %v587_v8 = vld [vmem:[%s2518_s26 + $0x2a0] sm:$0xff] }
 0x103   : > { %v762_v38 = vadd.f32 %v761_v63, %v648_v10  ;;  %v2896_v63 = vld [vmem:[%s2511_s19 + $0x230] sm:$0xff]  ;;  %v2899_v10 = vld [vmem:[%s2511_s19 + $0x238] sm:$0xff]  ;;  %1093 = vmatpush.xpose.msrb.mxu0 %v587_v8 }
 0x104   : > { %695 = vmatmul.f32.gmra.mxu0 %v2879_v11  ;;  %3541 = vst [vmem:[#allocation34_spill] sm:$0xff] %v2896_v63  ;;  %v2918_v8 = vld [vmem:[%s2511_s19 + $0x258] sm:$0xff] }
 0x105   : > { %808 = vmatmul.f32.gmra.mxu1 %v2882_v62  ;;  %v874_v36 = vpop.f32.mrf.mxu2  ;;  %v987_v61 = vpop.f32.mrf.mxu3  ;;  %3542 = vst [vmem:[#allocation35_spill] sm:$0xff] %v2899_v10  ;;  %v2902_v62 = vld [vmem:[%s2511_s19 + $0x220] sm:$0xff] }
 0x106   : > { %v875_v60 = vadd.f32 %v874_v36, %v762_v38  ;;  %3543 = vst [vmem:[#allocation36_spill] sm:$0xff] %v2902_v62  ;;  %v2915_v38 = vld [vmem:[%s2511_s19 + $0x250] sm:$0xff] }
 0x107   : > { %3545 = vst [vmem:[#allocation38_spill] sm:$0xff] %v2915_v38 }
 0x108   : > { %v988_v11 = vadd.f32 %v987_v61, %v875_v60  ;;  %3546 = vst [vmem:[#allocation39_spill] sm:$0xff] %v2918_v8 }
 0x109   : > { %v651_v39 = vpop.f32.mrf.mxu0 }
 0x10a   : > { %v764_v9 = vpop.f32.mrf.mxu1  ;;  %1730 = vst [vmem:[%s2907_s12] sm:$0xff] %v988_v11  ;;  %924 = vmatmul.f32.gmra.mxu2 %v2896_v63  ;;  %1037 = vmatmul.f32.gmra.mxu3 %v2899_v10  ;;  %v584_v10 = vld [vmem:[%s2518_s26 + $0x288] sm:$0xff]  ;;  %v2959_v63 = vld [vmem:[%s2511_s19 + $0x280] sm:$0xff] }
 0x10b   : > { %v765_v36 = vadd.f32 %v764_v9, %v651_v39  ;;  %v2924_v39 = vld [vmem:[%s2511_s19 + $0x248] sm:$0xff]  ;;  %1207 = vmatpush.xpose.msrb.mxu1 %v584_v10  ;;  %3555 = vst [vmem:[#allocation48_spill] sm:$0xff] %v2959_v63 }
 0x10c   : > { %698 = vmatmul.f32.gmra.mxu0 %v2902_v62  ;;  %3548 = vst [vmem:[#allocation41_spill] sm:$0xff] %v2924_v39  ;;  %v583_v62 = vld [vmem:[%s2518_s26 + $0x280] sm:$0xff] }
 0x10d   : > { %811 = vmatmul.f32.gmra.mxu1 %v2905_v37  ;;  %v877_v51 = vpop.f32.mrf.mxu2  ;;  %v990_v60 = vpop.f32.mrf.mxu3  ;;  %1094 = vmatpush.xpose.msrb.mxu0 %v583_v62 }
 0x10e   : > { %v878_v61 = vadd.f32 %v877_v51, %v765_v36  ;;  %v585_v36 = vld [vmem:[%s2518_s26 + $0x290] sm:$0xff]  ;;  %v586_v51 = vld [vmem:[%s2518_s26 + $0x298] sm:$0xff] }
 0x10f   : > { %1320 = vmatpush.xpose.msrb.mxu2 %v585_v36  ;;  %1433 = vmatpush.xpose.msrb.mxu3 %v586_v51  ;;  %v2945_v51 = vld [vmem:[%s2511_s19 + $0x268] sm:$0xff] }
 0x110   : > { %v991_v11 = vadd.f32 %v990_v60, %v878_v61  ;;  %3552 = vst [vmem:[#allocation45_spill] sm:$0xff] %v2945_v51 }
 0x111   : > { %v654_v50 = vpop.f32.mrf.mxu0 }
 0x112   : > { %v767_v9 = vpop.f32.mrf.mxu1  ;;  %1732 = vst [vmem:[%s2907_s12 + $0x10] sm:$0xff] %v991_v11  ;;  %927 = vmatmul.f32.gmra.mxu2 %v2915_v38  ;;  %1040 = vmatmul.f32.gmra.mxu3 %v2918_v8  ;;  %v2936_v38 = vld [vmem:[%s2511_s19 + $0x270] sm:$0xff] }
 0x113   : > { %v768_v37 = vadd.f32 %v767_v9, %v654_v50  ;;  %3549 = vst [vmem:[#allocation42_spill] sm:$0xff] %v2936_v38  ;;  %v2939_v50 = vld [vmem:[%s2511_s19 + $0x278] sm:$0xff] }
 0x114   : > { %701 = vmatmul.f32.gmra.mxu0 %v2921_v49  ;;  %3550 = vst [vmem:[#allocation43_spill] sm:$0xff] %v2939_v50  ;;  %v2942_v49 = vld [vmem:[%s2511_s19 + $0x260] sm:$0xff] }
 0x115   : > { %814 = vmatmul.f32.gmra.mxu1 %v2924_v39  ;;  %v880_v60 = vpop.f32.mrf.mxu2  ;;  %v993_v61 = vpop.f32.mrf.mxu3  ;;  %3551 = vst [vmem:[#allocation44_spill] sm:$0xff] %v2942_v49 }
 0x116   : > { %v881_v11 = vadd.f32 %v880_v60, %v768_v37 }
 0x118   : > { %v994_v9 = vadd.f32 %v993_v61, %v881_v11  ;;  %v2953_v61 = vld [vmem:[%s2511_s19 + $0x290] sm:$0xff]  ;;  %v2956_v11 = vld [vmem:[%s2511_s19 + $0x298] sm:$0xff] }
 0x119   : > { %v657_v36 = vpop.f32.mrf.mxu0  ;;  %3553 = vst [vmem:[#allocation46_spill] sm:$0xff] %v2953_v61 }
 0x11a   : > { %v770_v39 = vpop.f32.mrf.mxu1  ;;  %1734 = vst [vmem:[%s2907_s12 + $0x20] sm:$0xff] %v994_v9  ;;  %930 = vmatmul.f32.gmra.mxu2 %v2936_v38  ;;  %1043 = vmatmul.f32.gmra.mxu3 %v2939_v50  ;;  %v580_v50 = vld [vmem:[%s2518_s26 + $0x268] sm:$0xff]  ;;  %v2997_v38 = vld [vmem:[%s2511_s19 + $0x2c0] sm:$0xff] }
 0x11b   : > { %v771_v37 = vadd.f32 %v770_v39, %v657_v36  ;;  %3554 = vst [vmem:[#allocation47_spill] sm:$0xff] %v2956_v11  ;;  %v2962_v36 = vld [vmem:[%s2511_s19 + $0x288] sm:$0xff]  ;;  %1208 = vmatpush.xpose.msrb.mxu1 %v580_v50 }
 0x11c   : > { %704 = vmatmul.f32.gmra.mxu0 %v2942_v49  ;;  %3556 = vst [vmem:[#allocation49_spill] sm:$0xff] %v2962_v36  ;;  %v579_v49 = vld [vmem:[%s2518_s26 + $0x260] sm:$0xff] }
 0x11d   : > { %817 = vmatmul.f32.gmra.mxu1 %v2945_v51  ;;  %v883_v62 = vpop.f32.mrf.mxu2  ;;  %v996_v10 = vpop.f32.mrf.mxu3  ;;  %1095 = vmatpush.xpose.msrb.mxu0 %v579_v49  ;;  %3563 = vst [vmem:[#allocation56_spill] sm:$0xff] %v2997_v38 }
 0x11e   : > { %v884_v60 = vadd.f32 %v883_v62, %v771_v37  ;;  %v581_v37 = vld [vmem:[%s2518_s26 + $0x270] sm:$0xff]  ;;  %v582_v62 = vld [vmem:[%s2518_s26 + $0x278] sm:$0xff] }
 0x11f   : > { %1321 = vmatpush.xpose.msrb.mxu2 %v581_v37  ;;  %1434 = vmatpush.xpose.msrb.mxu3 %v582_v62  ;;  %v2983_v62 = vld [vmem:[%s2511_s19 + $0x2a8] sm:$0xff] }
 0x120   : > { %v997_v9 = vadd.f32 %v996_v10, %v884_v60  ;;  %3560 = vst [vmem:[#allocation53_spill] sm:$0xff] %v2983_v62 }
 0x121   : > { %v660_v8 = vpop.f32.mrf.mxu0 }
 0x122   : > { %v773_v39 = vpop.f32.mrf.mxu1  ;;  %1736 = vst [vmem:[%s2907_s12 + $0x30] sm:$0xff] %v997_v9  ;;  %933 = vmatmul.f32.gmra.mxu2 %v2953_v61  ;;  %1046 = vmatmul.f32.gmra.mxu3 %v2956_v11  ;;  %v2974_v61 = vld [vmem:[%s2511_s19 + $0x2b0] sm:$0xff] }
 0x123   : > { %v774_v51 = vadd.f32 %v773_v39, %v660_v8  ;;  %3557 = vst [vmem:[#allocation50_spill] sm:$0xff] %v2974_v61  ;;  %v2977_v8 = vld [vmem:[%s2511_s19 + $0x2b8] sm:$0xff] }
 0x124   : > { %707 = vmatmul.f32.gmra.mxu0 %v2959_v63  ;;  %3558 = vst [vmem:[#allocation51_spill] sm:$0xff] %v2977_v8  ;;  %v2980_v63 = vld [vmem:[%s2511_s19 + $0x2a0] sm:$0xff] }
 0x125   : > { %820 = vmatmul.f32.gmra.mxu1 %v2962_v36  ;;  %v886_v10 = vpop.f32.mrf.mxu2  ;;  %v999_v60 = vpop.f32.mrf.mxu3  ;;  %3559 = vst [vmem:[#allocation52_spill] sm:$0xff] %v2980_v63 }
 0x126   : > { %v887_v9 = vadd.f32 %v886_v10, %v774_v51 }
 0x128   : > { %v1000_v39 = vadd.f32 %v999_v60, %v887_v9  ;;  %v2991_v60 = vld [vmem:[%s2511_s19 + $0x2d0] sm:$0xff]  ;;  %v2994_v9 = vld [vmem:[%s2511_s19 + $0x2d8] sm:$0xff] }
 0x129   : > { %v663_v37 = vpop.f32.mrf.mxu0  ;;  %3561 = vst [vmem:[#allocation54_spill] sm:$0xff] %v2991_v60 }
 0x12a   : > { %v776_v36 = vpop.f32.mrf.mxu1  ;;  %1738 = vst [vmem:[%s2907_s12 + $0x40] sm:$0xff] %v1000_v39  ;;  %936 = vmatmul.f32.gmra.mxu2 %v2974_v61  ;;  %1049 = vmatmul.f32.gmra.mxu3 %v2977_v8  ;;  %v576_v8 = vld [vmem:[%s2518_s26 + $0x248] sm:$0xff]  ;;  %v3035_v61 = vld [vmem:[%s2511_s19 + $0x300] sm:$0xff] }
 0x12b   : > { %v777_v51 = vadd.f32 %v776_v36, %v663_v37  ;;  %3562 = vst [vmem:[#allocation55_spill] sm:$0xff] %v2994_v9  ;;  %v3000_v37 = vld [vmem:[%s2511_s19 + $0x2c8] sm:$0xff]  ;;  %1209 = vmatpush.xpose.msrb.mxu1 %v576_v8 }
 0x12c   : > { %710 = vmatmul.f32.gmra.mxu0 %v2980_v63  ;;  %3564 = vst [vmem:[#allocation57_spill] sm:$0xff] %v3000_v37  ;;  %v575_v63 = vld [vmem:[%s2518_s26 + $0x240] sm:$0xff] }
 0x12d   : > { %823 = vmatmul.f32.gmra.mxu1 %v2983_v62  ;;  %v889_v49 = vpop.f32.mrf.mxu2  ;;  %v1002_v50 = vpop.f32.mrf.mxu3  ;;  %1096 = vmatpush.xpose.msrb.mxu0 %v575_v63  ;;  %3571 = vst [vmem:[#allocation64_spill] sm:$0xff] %v3035_v61 }
 0x12e   : > { %v890_v10 = vadd.f32 %v889_v49, %v777_v51  ;;  %v577_v51 = vld [vmem:[%s2518_s26 + $0x250] sm:$0xff]  ;;  %v578_v49 = vld [vmem:[%s2518_s26 + $0x258] sm:$0xff] }
 0x12f   : > { %1322 = vmatpush.xpose.msrb.mxu2 %v577_v51  ;;  %1435 = vmatpush.xpose.msrb.mxu3 %v578_v49  ;;  %v3021_v49 = vld [vmem:[%s2511_s19 + $0x2e8] sm:$0xff] }
 0x130   : > { %v1003_v39 = vadd.f32 %v1002_v50, %v890_v10  ;;  %3568 = vst [vmem:[#allocation61_spill] sm:$0xff] %v3021_v49 }
 0x131   : > { %v666_v11 = vpop.f32.mrf.mxu0 }
 0x132   : > { %v779_v36 = vpop.f32.mrf.mxu1  ;;  %1740 = vst [vmem:[%s2907_s12 + $0x50] sm:$0xff] %v1003_v39  ;;  %939 = vmatmul.f32.gmra.mxu2 %v2991_v60  ;;  %1052 = vmatmul.f32.gmra.mxu3 %v2994_v9  ;;  %v3012_v60 = vld [vmem:[%s2511_s19 + $0x2f0] sm:$0xff] }
 0x133   : > { %v780_v62 = vadd.f32 %v779_v36, %v666_v11  ;;  %3565 = vst [vmem:[#allocation58_spill] sm:$0xff] %v3012_v60  ;;  %v3015_v11 = vld [vmem:[%s2511_s19 + $0x2f8] sm:$0xff] }
 0x134   : > { %713 = vmatmul.f32.gmra.mxu0 %v2997_v38  ;;  %3566 = vst [vmem:[#allocation59_spill] sm:$0xff] %v3015_v11  ;;  %v3018_v38 = vld [vmem:[%s2511_s19 + $0x2e0] sm:$0xff] }
 0x135   : > { %826 = vmatmul.f32.gmra.mxu1 %v3000_v37  ;;  %v892_v50 = vpop.f32.mrf.mxu2  ;;  %v1005_v10 = vpop.f32.mrf.mxu3  ;;  %3567 = vst [vmem:[#allocation60_spill] sm:$0xff] %v3018_v38 }
 0x136   : > { %v893_v39 = vadd.f32 %v892_v50, %v780_v62 }
 0x138   : > { %v1006_v36 = vadd.f32 %v1005_v10, %v893_v39  ;;  %v3029_v10 = vld [vmem:[%s2511_s19 + $0x310] sm:$0xff]  ;;  %v3032_v39 = vld [vmem:[%s2511_s19 + $0x318] sm:$0xff] }
 0x139   : > { %v669_v51 = vpop.f32.mrf.mxu0  ;;  %3569 = vst [vmem:[#allocation62_spill] sm:$0xff] %v3029_v10 }
 0x13a   : > { %v782_v37 = vpop.f32.mrf.mxu1  ;;  %1742 = vst [vmem:[%s2907_s12 + $0x60] sm:$0xff] %v1006_v36  ;;  %942 = vmatmul.f32.gmra.mxu2 %v3012_v60  ;;  %1055 = vmatmul.f32.gmra.mxu3 %v3015_v11  ;;  %v572_v11 = vld [vmem:[%s2518_s26 + $0x228] sm:$0xff]  ;;  %v3073_v60 = vld [vmem:[%s2511_s19 + $0x340] sm:$0xff] }
 0x13b   : > { %v783_v62 = vadd.f32 %v782_v37, %v669_v51  ;;  %3570 = vst [vmem:[#allocation63_spill] sm:$0xff] %v3032_v39  ;;  %v3038_v51 = vld [vmem:[%s2511_s19 + $0x308] sm:$0xff]  ;;  %1210 = vmatpush.xpose.msrb.mxu1 %v572_v11 }
 0x13c   : > { %716 = vmatmul.f32.gmra.mxu0 %v3018_v38  ;;  %3572 = vst [vmem:[#allocation65_spill] sm:$0xff] %v3038_v51  ;;  %v571_v38 = vld [vmem:[%s2518_s26 + $0x220] sm:$0xff] }
 0x13d   : > { %829 = vmatmul.f32.gmra.mxu1 %v3021_v49  ;;  %v895_v63 = vpop.f32.mrf.mxu2  ;;  %v1008_v8 = vpop.f32.mrf.mxu3  ;;  %1097 = vmatpush.xpose.msrb.mxu0 %v571_v38  ;;  %3579 = vst [vmem:[#allocation72_spill] sm:$0xff] %v3073_v60 }
 0x13e   : > { %v896_v50 = vadd.f32 %v895_v63, %v783_v62  ;;  %v573_v62 = vld [vmem:[%s2518_s26 + $0x230] sm:$0xff]  ;;  %v574_v63 = vld [vmem:[%s2518_s26 + $0x238] sm:$0xff] }
 0x13f   : > { %1323 = vmatpush.xpose.msrb.mxu2 %v573_v62  ;;  %1436 = vmatpush.xpose.msrb.mxu3 %v574_v63  ;;  %v3059_v63 = vld [vmem:[%s2511_s19 + $0x328] sm:$0xff] }
 0x140   : > { %v1009_v36 = vadd.f32 %v1008_v8, %v896_v50  ;;  %3576 = vst [vmem:[#allocation69_spill] sm:$0xff] %v3059_v63 }
 0x141   : > { %v672_v9 = vpop.f32.mrf.mxu0 }
 0x142   : > { %v785_v37 = vpop.f32.mrf.mxu1  ;;  %1744 = vst [vmem:[%s2907_s12 + $0x70] sm:$0xff] %v1009_v36  ;;  %945 = vmatmul.f32.gmra.mxu2 %v3029_v10  ;;  %1058 = vmatmul.f32.gmra.mxu3 %v3032_v39  ;;  %v3050_v10 = vld [vmem:[%s2511_s19 + $0x330] sm:$0xff] }
 0x143   : > { %v786_v49 = vadd.f32 %v785_v37, %v672_v9  ;;  %3573 = vst [vmem:[#allocation66_spill] sm:$0xff] %v3050_v10  ;;  %v3053_v9 = vld [vmem:[%s2511_s19 + $0x338] sm:$0xff] }
 0x144   : > { %719 = vmatmul.f32.gmra.mxu0 %v3035_v61  ;;  %3574 = vst [vmem:[#allocation67_spill] sm:$0xff] %v3053_v9  ;;  %v3056_v61 = vld [vmem:[%s2511_s19 + $0x320] sm:$0xff] }
 0x145   : > { %832 = vmatmul.f32.gmra.mxu1 %v3038_v51  ;;  %v898_v8 = vpop.f32.mrf.mxu2  ;;  %v1011_v50 = vpop.f32.mrf.mxu3  ;;  %3575 = vst [vmem:[#allocation68_spill] sm:$0xff] %v3056_v61 }
 0x146   : > { %v899_v36 = vadd.f32 %v898_v8, %v786_v49 }
 0x148   : > { %v1012_v37 = vadd.f32 %v1011_v50, %v899_v36  ;;  %v3067_v50 = vld [vmem:[%s2511_s19 + $0x350] sm:$0xff]  ;;  %v3070_v36 = vld [vmem:[%s2511_s19 + $0x358] sm:$0xff] }
 0x149   : > { %v675_v62 = vpop.f32.mrf.mxu0  ;;  %3577 = vst [vmem:[#allocation70_spill] sm:$0xff] %v3067_v50 }
 0x14a   : > { %v788_v51 = vpop.f32.mrf.mxu1  ;;  %1746 = vst [vmem:[%s2907_s12 + $0x80] sm:$0xff] %v1012_v37  ;;  %948 = vmatmul.f32.gmra.mxu2 %v3050_v10  ;;  %1061 = vmatmul.f32.gmra.mxu3 %v3053_v9  ;;  %v568_v9 = vld [vmem:[%s2518_s26 + $0x208] sm:$0xff]  ;;  %v3111_v10 = vld [vmem:[%s2511_s19 + $0x380] sm:$0xff] }
 0x14b   : > { %v789_v49 = vadd.f32 %v788_v51, %v675_v62  ;;  %3578 = vst [vmem:[#allocation71_spill] sm:$0xff] %v3070_v36  ;;  %v3076_v62 = vld [vmem:[%s2511_s19 + $0x348] sm:$0xff]  ;;  %1211 = vmatpush.xpose.msrb.mxu1 %v568_v9 }
 0x14c   : > { %722 = vmatmul.f32.gmra.mxu0 %v3056_v61  ;;  %3580 = vst [vmem:[#allocation73_spill] sm:$0xff] %v3076_v62  ;;  %v567_v61 = vld [vmem:[%s2518_s26 + $0x200] sm:$0xff] }
 0x14d   : > { %835 = vmatmul.f32.gmra.mxu1 %v3059_v63  ;;  %v901_v38 = vpop.f32.mrf.mxu2  ;;  %v1014_v11 = vpop.f32.mrf.mxu3  ;;  %1098 = vmatpush.xpose.msrb.mxu0 %v567_v61  ;;  %3587 = vst [vmem:[#allocation80_spill] sm:$0xff] %v3111_v10 }
 0x14e   : > { %v902_v8 = vadd.f32 %v901_v38, %v789_v49  ;;  %v569_v49 = vld [vmem:[%s2518_s26 + $0x210] sm:$0xff]  ;;  %v570_v38 = vld [vmem:[%s2518_s26 + $0x218] sm:$0xff]  ;;  %s2176_s26 = scalar_lea.hbm %s2175_s4, 512 }
 0x14f   : > { %1324 = vmatpush.xpose.msrb.mxu2 %v569_v49  ;;  %1437 = vmatpush.xpose.msrb.mxu3 %v570_v38  ;;  %v3097_v38 = vld [vmem:[%s2511_s19 + $0x368] sm:$0xff]  ;;  %p2177_p6 = scmp.ne.s32.totalorder %s2175_s4, %s2176_s26  ;;  %p2182_p8 = scmp.lt.s32.totalorder %s2180_s30, %s2176_s26 }
 0x150   : > { %v1015_v37 = vadd.f32 %v1014_v11, %v902_v8  ;;  %3584 = vst [vmem:[#allocation77_spill] sm:$0xff] %v3097_v38 }
 0x151   : > { %v678_v39 = vpop.f32.mrf.mxu0  ;;  %p2178_p7 = pnand %p2177_p6, %p2478_p1  ;;  %p2183_p9 = por %p2182_p8, %p2181_p2 }
 0x152   : > { %v791_v51 = vpop.f32.mrf.mxu1  ;;  %1748 = vst [vmem:[%s2907_s12 + $0x90] sm:$0xff] %v1015_v37  ;;  %951 = vmatmul.f32.gmra.mxu2 %v3067_v50  ;;  %1064 = vmatmul.f32.gmra.mxu3 %v3070_v36  ;;  %v3088_v50 = vld [vmem:[%s2511_s19 + $0x370] sm:$0xff] }
 0x153   : > { %v792_v63 = vadd.f32 %v791_v51, %v678_v39  ;;  %3581 = vst [vmem:[#allocation74_spill] sm:$0xff] %v3088_v50  ;;  %v3091_v39 = vld [vmem:[%s2511_s19 + $0x378] sm:$0xff]  ;;  %p2179_p11 = pneg %p2178_p7 }
 0x154   : > { %725 = vmatmul.f32.gmra.mxu0 %v3073_v60  ;;  %3582 = vst [vmem:[#allocation75_spill] sm:$0xff] %v3091_v39  ;;  %v3094_v60 = vld [vmem:[%s2511_s19 + $0x360] sm:$0xff] }
 0x155   : > { %838 = vmatmul.f32.gmra.mxu1 %v3076_v62  ;;  %v904_v11 = vpop.f32.mrf.mxu2  ;;  %v1017_v8 = vpop.f32.mrf.mxu3  ;;  %3583 = vst [vmem:[#allocation76_spill] sm:$0xff] %v3094_v60  ;;  %p2184_p10 = pnand %p2183_p9, %p2179_p11 }
 0x156   : > { %v905_v37 = vadd.f32 %v904_v11, %v792_v63 }
 0x158   : > { %v1018_v51 = vadd.f32 %v1017_v8, %v905_v37  ;;  %v3105_v8 = vld [vmem:[%s2511_s19 + $0x390] sm:$0xff]  ;;  %v3108_v37 = vld [vmem:[%s2511_s19 + $0x398] sm:$0xff] }
 0x159   : > { %v681_v49 = vpop.f32.mrf.mxu0  ;;  %3585 = vst [vmem:[#allocation78_spill] sm:$0xff] %v3105_v8 }
 0x15a   : > { %v794_v62 = vpop.f32.mrf.mxu1  ;;  %1750 = vst [vmem:[%s2907_s12 + $0xa0] sm:$0xff] %v1018_v51  ;;  %954 = vmatmul.f32.gmra.mxu2 %v3088_v50  ;;  %1067 = vmatmul.f32.gmra.mxu3 %v3091_v39  ;;  %v3128_v50 = vld [vmem:[%s2511_s19 + $0x3a0] sm:$0xff] }
 0x15b   : > { %v795_v63 = vadd.f32 %v794_v62, %v681_v49  ;;  %3586 = vst [vmem:[#allocation79_spill] sm:$0xff] %v3108_v37  ;;  %v3114_v49 = vld [vmem:[%s2511_s19 + $0x388] sm:$0xff] }
 0x15c   : > { %728 = vmatmul.f32.gmra.mxu0 %v3094_v60  ;;  %3588 = vst [vmem:[#allocation81_spill] sm:$0xff] %v3114_v49  ;;  %v3125_v60 = vld [vmem:[%s2511_s19 + $0x3b8] sm:$0xff] }
 0x15d   : > { %841 = vmatmul.f32.gmra.mxu1 %v3097_v38  ;;  %v907_v61 = vpop.f32.mrf.mxu2  ;;  %v1020_v9 = vpop.f32.mrf.mxu3  ;;  %v3122_v38 = vld [vmem:[%s2511_s19 + $0x3b0] sm:$0xff]  ;;  %3590 = vst [vmem:[#allocation83_spill] sm:$0xff] %v3125_v60 }
 0x15e   : > { %v908_v11 = vadd.f32 %v907_v61, %v795_v63  ;;  %3589 = vst [vmem:[#allocation82_spill] sm:$0xff] %v3122_v38 }
 0x15f   : > { %3591 = vst [vmem:[#allocation84_spill] sm:$0xff] %v3128_v50 }
 0x160   : > { %v1021_v51 = vadd.f32 %v1020_v9, %v908_v11 }
 0x161   : > { %v684_v36 = vpop.f32.mrf.mxu0 }
 0x162   : > { %v797_v62 = vpop.f32.mrf.mxu1  ;;  %1752 = vst [vmem:[%s2907_s12 + $0xb0] sm:$0xff] %v1021_v51  ;;  %957 = vmatmul.f32.gmra.mxu2 %v3105_v8  ;;  %1070 = vmatmul.f32.gmra.mxu3 %v3108_v37  ;;  %v3145_v8 = vld [vmem:[%s2511_s19 + $0x3c0] sm:$0xff] }
 0x163   : > { %v798_v63 = vadd.f32 %v797_v62, %v684_v36  ;;  %v3131_v62 = vld [vmem:[%s2511_s19 + $0x3a8] sm:$0xff]  ;;  %3595 = vst [vmem:[#allocation88_spill] sm:$0xff] %v3145_v8 }
 0x164   : > { %731 = vmatmul.f32.gmra.mxu0 %v3111_v10  ;;  %3592 = vst [vmem:[#allocation85_spill] sm:$0xff] %v3131_v62  ;;  %v3142_v10 = vld [vmem:[%s2511_s19 + $0x3d8] sm:$0xff] }
 0x165   : > { %844 = vmatmul.f32.gmra.mxu1 %v3114_v49  ;;  %v910_v61 = vpop.f32.mrf.mxu2  ;;  %v1023_v9 = vpop.f32.mrf.mxu3  ;;  %v3139_v49 = vld [vmem:[%s2511_s19 + $0x3d0] sm:$0xff]  ;;  %3594 = vst [vmem:[#allocation87_spill] sm:$0xff] %v3142_v10 }
 0x166   : > { %v911_v11 = vadd.f32 %v910_v61, %v798_v63  ;;  %3593 = vst [vmem:[#allocation86_spill] sm:$0xff] %v3139_v49 }
 0x168   : > { %v1024_v51 = vadd.f32 %v1023_v9, %v911_v11 }
 0x169   : > { %v687_v39 = vpop.f32.mrf.mxu0 }
 0x16a   : > { %v800_v36 = vpop.f32.mrf.mxu1  ;;  %1754 = vst [vmem:[%s2907_s12 + $0xc0] sm:$0xff] %v1024_v51  ;;  %960 = vmatmul.f32.gmra.mxu2 %v3122_v38  ;;  %1073 = vmatmul.f32.gmra.mxu3 %v3125_v60 }
 0x16b   : > { %v801_v63 = vadd.f32 %v800_v36, %v687_v39  ;;  %v3148_v36 = vld [vmem:[%s2511_s19 + $0x3c8] sm:$0xff] }
 0x16c   : > { %734 = vmatmul.f32.gmra.mxu0 %v3128_v50  ;;  %3596 = vst [vmem:[#allocation89_spill] sm:$0xff] %v3148_v36  ;;  %v3159_v50 = vld [vmem:[%s2511_s19 + $0x3f8] sm:$0xff] }
 0x16d   : > { %847 = vmatmul.f32.gmra.mxu1 %v3131_v62  ;;  %v913_v61 = vpop.f32.mrf.mxu2  ;;  %v1026_v9 = vpop.f32.mrf.mxu3  ;;  %v3156_v62 = vld [vmem:[%s2511_s19 + $0x3f0] sm:$0xff]  ;;  %3598 = vst [vmem:[#allocation91_spill] sm:$0xff] %v3159_v50 }
 0x16e   : > { %v914_v11 = vadd.f32 %v913_v61, %v801_v63  ;;  %3597 = vst [vmem:[#allocation90_spill] sm:$0xff] %v3156_v62 }
 0x170   : > { %v1027_v51 = vadd.f32 %v1026_v9, %v914_v11 }
 0x171   : > { %v690_v37 = vpop.f32.mrf.mxu0 }
 0x172   : > { %v803_v39 = vpop.f32.mrf.mxu1  ;;  %1756 = vst [vmem:[%s2907_s12 + $0xd0] sm:$0xff] %v1027_v51  ;;  %963 = vmatmul.f32.gmra.mxu2 %v3139_v49  ;;  %1076 = vmatmul.f32.gmra.mxu3 %v3142_v10  ;;  %v3162_v51 = vld [vmem:[%s2511_s19 + $0x3e0] sm:$0xff] }
 0x173   : > { %v804_v63 = vadd.f32 %v803_v39, %v690_v37  ;;  %3599 = vst [vmem:[#allocation92_spill] sm:$0xff] %v3162_v51  ;;  %v3165_v39 = vld [vmem:[%s2511_s19 + $0x3e8] sm:$0xff] }
 0x174   : > { %737 = vmatmul.f32.gmra.mxu0 %v3145_v8  ;;  %3600 = vst [vmem:[#allocation93_spill] sm:$0xff] %v3165_v39 }
 0x175   : > { %850 = vmatmul.f32.gmra.mxu1 %v3148_v36  ;;  %v916_v61 = vpop.f32.mrf.mxu2  ;;  %v1029_v9 = vpop.f32.mrf.mxu3 }
 0x176   : > { %v917_v11 = vadd.f32 %v916_v61, %v804_v63 }
 0x178   : > { %v1030_v60 = vadd.f32 %v1029_v9, %v917_v11 }
 0x179   : > { %v693_v38 = vpop.f32.mrf.mxu0 }
 0x17a   : > { %v806_v37 = vpop.f32.mrf.mxu1  ;;  %1758 = vst [vmem:[%s2907_s12 + $0xe0] sm:$0xff] %v1030_v60  ;;  %966 = vmatmul.f32.gmra.mxu2 %v3156_v62  ;;  %1079 = vmatmul.f32.gmra.mxu3 %v3159_v50  ;;  %v2096_v60 = vld [vmem:[%s2511_s19 + $0x10] sm:$0xff]  ;;  %v2099_v50 = vld [vmem:[%s2511_s19 + $0x8] sm:$0xff] }
 0x17b   : > { %v807_v36 = vadd.f32 %v806_v37, %v693_v38  ;;  %v2097_v38 = vld [vmem:[%s2511_s19 + $0x18] sm:$0xff]  ;;  %v2098_v37 = vld [vmem:[%s2511_s19] sm:$0xff]  ;;  %s1810_s19 = sshll.u32 %s2907_s12, 4  ;;  %s1811_s19 = int_to_ptr.vmem [resolvable:$true] %s1810_s19 }
 0x17c   : > { %740 = vmatmul.f32.gmra.mxu0 %v3162_v51 }
 0x17d   : > { %853 = vmatmul.f32.gmra.mxu1 %v3165_v39  ;;  %v919_v63 = vpop.f32.mrf.mxu2  ;;  %v1032_v61 = vpop.f32.mrf.mxu3 }
 0x17e   : > { %v920_v9 = vadd.f32 %v919_v63, %v807_v36 }
 0x180   : > { %v1033_v11 = vadd.f32 %v1032_v61, %v920_v9 }
 0x181   : > { %v696_v8 = vpop.f32.mrf.mxu0 }
 0x182   : > { %v809_v10 = vpop.f32.mrf.mxu1  ;;  %1760 = vst [vmem:[%s2907_s12 + $0xf0] sm:$0xff] %v1033_v11  ;;  %1325 = vmatmul.f32.vlgmr.msrb.gmra.mxu2 %v2096_v60  ;;  %1438 = vmatmul.f32.vlgmr.msrb.gmra.mxu3 %v2097_v38 }
 0x183   : > { %v810_v62 = vadd.f32 %v809_v10, %v696_v8 }
 0x184   : > { %1099 = vmatmul.f32.vlgmr.msrb.gmra.mxu0 %v2098_v37 }
 0x185   : > { %1212 = vmatmul.f32.vlgmr.msrb.gmra.mxu1 %v2099_v50  ;;  %v922_v51 = vpop.f32.mrf.mxu2  ;;  %v1035_v49 = vpop.f32.mrf.mxu3 }
 0x186   : > { %v923_v39 = vadd.f32 %v922_v51, %v810_v62 }
 0x188   : > { %v1036_v48 = vadd.f32 %v1035_v49, %v923_v39 }
 0x189   : > { %v699_v36 = vpop.f32.mrf.mxu0 }
 0x18a   : > { %v812_v63 = vpop.f32.mrf.mxu1  ;;  %1762 = vst [vmem:[%s2907_s12 + $0x100] sm:$0xff] %v1036_v48  ;;  %1328 = vmatmul.f32.gmra.mxu2 %v2603_v14  ;;  %1441 = vmatmul.f32.gmra.mxu3 %v2606_v15 }
 0x18b   : > { %v813_v61 = vadd.f32 %v812_v63, %v699_v36 }
 0x18c   : > { %1102 = vmatmul.f32.gmra.mxu0 %v2609_v16 }
 0x18d   : > { %1215 = vmatmul.f32.gmra.mxu1 %v2613_v18  ;;  %v925_v10 = vpop.f32.mrf.mxu2  ;;  %v1038_v8 = vpop.f32.mrf.mxu3 }
 0x18e   : > { %v926_v50 = vadd.f32 %v925_v10, %v813_v61 }
 0x190   : > { %v1039_v9 = vadd.f32 %v1038_v8, %v926_v50 }
 0x191   : > { %v702_v62 = vpop.f32.mrf.mxu0 }
 0x192   : > { %v815_v51 = vpop.f32.mrf.mxu1  ;;  %1764 = vst [vmem:[%s2907_s12 + $0x110] sm:$0xff] %v1039_v9  ;;  %1331 = vmatmul.f32.gmra.mxu2 %v2621_v20  ;;  %1444 = vmatmul.f32.gmra.mxu3 %v2624_v21 }
 0x193   : > { %v816_v48 = vadd.f32 %v815_v51, %v702_v62 }
 0x194   : > { %1105 = vmatmul.f32.gmra.mxu0 %v2627_v22 }
 0x195   : > { %1218 = vmatmul.f32.gmra.mxu1 %v2630_v23  ;;  %v928_v14 = vpop.f32.mrf.mxu2  ;;  %v1041_v15 = vpop.f32.mrf.mxu3 }
 0x196   : > { %v929_v16 = vadd.f32 %v928_v14, %v816_v48 }
 0x198   : > { %v1042_v18 = vadd.f32 %v1041_v15, %v929_v16 }
 0x199   : > { %v705_v49 = vpop.f32.mrf.mxu0 }
 0x19a   : > { %v818_v39 = vpop.f32.mrf.mxu1  ;;  %1766 = vst [vmem:[%s2907_s12 + $0x120] sm:$0xff] %v1042_v18  ;;  %1334 = vmatmul.f32.gmra.mxu2 %v2641_v28  ;;  %1447 = vmatmul.f32.gmra.mxu3 %v2644_v29 }
 0x19b   : > { %v819_v11 = vadd.f32 %v818_v39, %v705_v49 }
 0x19c   : > { %1108 = vmatmul.f32.gmra.mxu0 %v2647_v30 }
 0x19d   : > { %1221 = vmatmul.f32.gmra.mxu1 %v2650_v31  ;;  %v931_v20 = vpop.f32.mrf.mxu2  ;;  %v1044_v21 = vpop.f32.mrf.mxu3 }
 0x19e   : > { %v932_v22 = vadd.f32 %v931_v20, %v819_v11 }
 0x1a0   : > { %v1045_v23 = vadd.f32 %v1044_v21, %v932_v22 }
 0x1a1   : > { %v708_v60 = vpop.f32.mrf.mxu0 }
 0x1a2   : > { %v821_v38 = vpop.f32.mrf.mxu1  ;;  %1768 = vst [vmem:[%s2907_s12 + $0x130] sm:$0xff] %v1045_v23  ;;  %1337 = vmatmul.f32.gmra.mxu2 %v2657_v32  ;;  %1450 = vmatmul.f32.gmra.mxu3 %v2660_v33 }
 0x1a3   : > { %v822_v37 = vadd.f32 %v821_v38, %v708_v60 }
 0x1a4   : > { %1111 = vmatmul.f32.gmra.mxu0 %v2663_v34 }
 0x1a5   : > { %1224 = vmatmul.f32.gmra.mxu1 %v2666_v35  ;;  %v934_v28 = vpop.f32.mrf.mxu2  ;;  %v1047_v29 = vpop.f32.mrf.mxu3 }
 0x1a6   : > { %v935_v30 = vadd.f32 %v934_v28, %v822_v37 }
 0x1a8   : > { %v1048_v31 = vadd.f32 %v1047_v29, %v935_v30  ;;  %v3601_v30 = vld [vmem:[#allocation18_spill] sm:$0xff] }
 0x1a9   : > { %v711_v36 = vpop.f32.mrf.mxu0 }
 0x1aa   : > { %v824_v63 = vpop.f32.mrf.mxu1  ;;  %1770 = vst [vmem:[%s2907_s12 + $0x140] sm:$0xff] %v1048_v31  ;;  %1340 = vmatmul.f32.gmra.mxu2 %v2677_v40  ;;  %1453 = vmatmul.f32.gmra.mxu3 %v2680_v41 }
 0x1ab   : > { %v825_v61 = vadd.f32 %v824_v63, %v711_v36  ;;  %v3602_v36 = vld [vmem:[#allocation19_spill] sm:$0xff] }
 0x1ac   : > { %1114 = vmatmul.f32.gmra.mxu0 %v2683_v42 }
 0x1ad   : > { %1227 = vmatmul.f32.gmra.mxu1 %v2686_v43  ;;  %v937_v32 = vpop.f32.mrf.mxu2  ;;  %v1050_v33 = vpop.f32.mrf.mxu3 }
 0x1ae   : > { %v938_v34 = vadd.f32 %v937_v32, %v825_v61 }
 0x1b0   : > { %v1051_v35 = vadd.f32 %v1050_v33, %v938_v34  ;;  %v3605_v34 = vld [vmem:[#allocation22_spill] sm:$0xff] }
 0x1b1   : > { %v714_v10 = vpop.f32.mrf.mxu0 }
 0x1b2   : > { %v827_v8 = vpop.f32.mrf.mxu1  ;;  %1772 = vst [vmem:[%s2907_s12 + $0x150] sm:$0xff] %v1051_v35  ;;  %1343 = vmatmul.f32.gmra.mxu2 %v2693_v44  ;;  %1456 = vmatmul.f32.gmra.mxu3 %v2696_v45 }
 0x1b3   : > { %v828_v50 = vadd.f32 %v827_v8, %v714_v10  ;;  %v3606_v10 = vld [vmem:[#allocation23_spill] sm:$0xff]  ;;  %v3607_v8 = vld [vmem:[#allocation24_spill] sm:$0xff] }
 0x1b4   : > { %1117 = vmatmul.f32.gmra.mxu0 %v2699_v46 }
 0x1b5   : > { %1230 = vmatmul.f32.gmra.mxu1 %v2702_v47  ;;  %v940_v40 = vpop.f32.mrf.mxu2  ;;  %v1053_v41 = vpop.f32.mrf.mxu3 }
 0x1b6   : > { %v941_v42 = vadd.f32 %v940_v40, %v828_v50  ;;  %v3608_v50 = vld [vmem:[#allocation25_spill] sm:$0xff] }
 0x1b8   : > { %v1054_v43 = vadd.f32 %v1053_v41, %v941_v42 }
 0x1b9   : > { %v717_v9 = vpop.f32.mrf.mxu0 }
 0x1ba   : > { %v830_v62 = vpop.f32.mrf.mxu1  ;;  %1774 = vst [vmem:[%s2907_s12 + $0x160] sm:$0xff] %v1054_v43  ;;  %1346 = vmatmul.f32.gmra.mxu2 %v2713_v52  ;;  %1459 = vmatmul.f32.gmra.mxu3 %v2716_v53 }
 0x1bb   : > { %v831_v51 = vadd.f32 %v830_v62, %v717_v9 }
 0x1bc   : > { %1120 = vmatmul.f32.gmra.mxu0 %v2719_v54 }
 0x1bd   : > { %1233 = vmatmul.f32.gmra.mxu1 %v2722_v55  ;;  %v943_v44 = vpop.f32.mrf.mxu2  ;;  %v1056_v45 = vpop.f32.mrf.mxu3 }
 0x1be   : > { %v944_v46 = vadd.f32 %v943_v44, %v831_v51  ;;  %v3609_v51 = vld [vmem:[#allocation26_spill] sm:$0xff] }
 0x1c0   : > { %v1057_v47 = vadd.f32 %v1056_v45, %v944_v46  ;;  %v3610_v45 = vld [vmem:[#allocation27_spill] sm:$0xff]  ;;  %v3611_v46 = vld [vmem:[#allocation28_spill] sm:$0xff] }
 0x1c1   : > { %v720_v48 = vpop.f32.mrf.mxu0 }
 0x1c2   : > { %v833_v14 = vpop.f32.mrf.mxu1  ;;  %1776 = vst [vmem:[%s2907_s12 + $0x170] sm:$0xff] %v1057_v47  ;;  %1349 = vmatmul.f32.gmra.mxu2 %v2729_v56  ;;  %1462 = vmatmul.f32.gmra.mxu3 %v2732_v57  ;;  %v3612_v47 = vld [vmem:[#allocation29_spill] sm:$0xff] }
 0x1c3   : > { %v834_v15 = vadd.f32 %v833_v14, %v720_v48 }
 0x1c4   : > { %1123 = vmatmul.f32.gmra.mxu0 %v2735_v58 }
 0x1c5   : > { %1236 = vmatmul.f32.gmra.mxu1 %v2738_v59  ;;  %v946_v52 = vpop.f32.mrf.mxu2  ;;  %v1059_v53 = vpop.f32.mrf.mxu3 }
 0x1c6   : > { %v947_v54 = vadd.f32 %v946_v52, %v834_v15 }
 0x1c8   : > { %v1060_v55 = vadd.f32 %v1059_v53, %v947_v54 }
 0x1c9   : > { %v723_v16 = vpop.f32.mrf.mxu0 }
 0x1ca   : > { %v836_v18 = vpop.f32.mrf.mxu1  ;;  %1778 = vst [vmem:[%s2907_s12 + $0x180] sm:$0xff] %v1060_v55  ;;  %1352 = vmatmul.f32.gmra.mxu2 %v2749_v0  ;;  %1465 = vmatmul.f32.gmra.mxu3 %v2752_v1  ;;  %v3613_v55 = vld [vmem:[#allocation30_spill] sm:$0xff] }
 0x1cb   : > { %v837_v49 = vadd.f32 %v836_v18, %v723_v16  ;;  %v3614_v18 = vld [vmem:[#allocation31_spill] sm:$0xff] }
 0x1cc   : > { %1126 = vmatmul.f32.gmra.mxu0 %v2755_v2 }
 0x1cd   : > { %1239 = vmatmul.f32.gmra.mxu1 %v2758_v3  ;;  %v949_v56 = vpop.f32.mrf.mxu2  ;;  %v1062_v57 = vpop.f32.mrf.mxu3 }
 0x1ce   : > { %v950_v58 = vadd.f32 %v949_v56, %v837_v49  ;;  %v3615_v49 = vld [vmem:[#allocation32_spill] sm:$0xff]  ;;  %v3616_v56 = vld [vmem:[#allocation33_spill] sm:$0xff] }
 0x1d0   : > { %v1063_v59 = vadd.f32 %v1062_v57, %v950_v58 }
 0x1d1   : > { %v726_v39 = vpop.f32.mrf.mxu0 }
 0x1d2   : > { %v839_v11 = vpop.f32.mrf.mxu1  ;;  %1780 = vst [vmem:[%s2907_s12 + $0x190] sm:$0xff] %v1063_v59  ;;  %1355 = vmatmul.f32.gmra.mxu2 %v2765_v4  ;;  %1468 = vmatmul.f32.gmra.mxu3 %v2768_v5 }
 0x1d3   : > { %v840_v20 = vadd.f32 %v839_v11, %v726_v39 }
 0x1d4   : > { %1129 = vmatmul.f32.gmra.mxu0 %v2771_v6 }
 0x1d5   : > { %1242 = vmatmul.f32.gmra.mxu1 %v2774_v7  ;;  %v952_v0 = vpop.f32.mrf.mxu2  ;;  %v1065_v1 = vpop.f32.mrf.mxu3 }
 0x1d6   : > { %v953_v2 = vadd.f32 %v952_v0, %v840_v20  ;;  %v3617_v0 = vld [vmem:[#allocation34_spill] sm:$0xff] }
 0x1d8   : > { %v1066_v3 = vadd.f32 %v1065_v1, %v953_v2  ;;  %v3618_v2 = vld [vmem:[#allocation35_spill] sm:$0xff] }
 0x1d9   : > { %v729_v21 = vpop.f32.mrf.mxu0 }
 0x1da   : > { %v842_v22 = vpop.f32.mrf.mxu1  ;;  %1782 = vst [vmem:[%s2907_s12 + $0x1a0] sm:$0xff] %v1066_v3  ;;  %1358 = vmatmul.f32.gmra.mxu2 %v2785_v12  ;;  %1471 = vmatmul.f32.gmra.mxu3 %v2788_v13  ;;  %v3619_v3 = vld [vmem:[#allocation36_spill] sm:$0xff] }
 0x1db   : > { %v843_v23 = vadd.f32 %v842_v22, %v729_v21  ;;  %v3620_v21 = vld [vmem:[#allocation37_spill] sm:$0xff] }
 0x1dc   : > { %1132 = vmatmul.f32.gmra.mxu0 %v2791_v17 }
 0x1dd   : > { %1245 = vmatmul.f32.gmra.mxu1 %v2794_v19  ;;  %v955_v4 = vpop.f32.mrf.mxu2  ;;  %v1068_v5 = vpop.f32.mrf.mxu3 }
 0x1de   : > { %v956_v6 = vadd.f32 %v955_v4, %v843_v23 }
 0x1e0   : > { %v1069_v7 = vadd.f32 %v1068_v5, %v956_v6 }
 0x1e1   : > { %v732_v60 = vpop.f32.mrf.mxu0 }
 0x1e2   : > { %v845_v38 = vpop.f32.mrf.mxu1  ;;  %1784 = vst [vmem:[%s2907_s12 + $0x1b0] sm:$0xff] %v1069_v7  ;;  %1361 = vmatmul.f32.gmra.mxu2 %v2801_v24  ;;  %1474 = vmatmul.f32.gmra.mxu3 %v2804_v25  ;;  %v3603_v24 = vld [vmem:[#allocation20_spill] sm:$0xff]  ;;  %v3604_v25 = vld [vmem:[#allocation21_spill] sm:$0xff] }
 0x1e3   : > { %v846_v37 = vadd.f32 %v845_v38, %v732_v60  ;;  %v3621_v60 = vld [vmem:[#allocation38_spill] sm:$0xff] }
 0x1e4   : > { %1135 = vmatmul.f32.gmra.mxu0 %v2807_v26 }
 0x1e5   : > { %1248 = vmatmul.f32.gmra.mxu1 %v2810_v27  ;;  %v958_v12 = vpop.f32.mrf.mxu2  ;;  %v1071_v13 = vpop.f32.mrf.mxu3 }
 0x1e6   : > { %v959_v17 = vadd.f32 %v958_v12, %v846_v37  ;;  %v3622_v37 = vld [vmem:[#allocation39_spill] sm:$0xff]  ;;  %v3623_v12 = vld [vmem:[#allocation40_spill] sm:$0xff] }
 0x1e8   : > { %v1072_v19 = vadd.f32 %v1071_v13, %v959_v17  ;;  %v3624_v13 = vld [vmem:[#allocation41_spill] sm:$0xff] }
 0x1e9   : > { %v735_v28 = vpop.f32.mrf.mxu0 }
 0x1ea   : > { %v848_v29 = vpop.f32.mrf.mxu1  ;;  %1786 = vst [vmem:[%s2907_s12 + $0x1c0] sm:$0xff] %v1072_v19  ;;  %1364 = vmatmul.f32.gmra.mxu2 %v3601_v30  ;;  %1477 = vmatmul.f32.gmra.mxu3 %v3602_v36  ;;  %v3625_v36 = vld [vmem:[#allocation42_spill] sm:$0xff] }
 0x1eb   : > { %v849_v31 = vadd.f32 %v848_v29, %v735_v28 }
 0x1ec   : > { %1138 = vmatmul.f32.gmra.mxu0 %v3603_v24 }
 0x1ed   : > { %1251 = vmatmul.f32.gmra.mxu1 %v3604_v25  ;;  %v961_v26 = vpop.f32.mrf.mxu2  ;;  %v1074_v63 = vpop.f32.mrf.mxu3  ;;  %v3626_v25 = vld [vmem:[#allocation43_spill] sm:$0xff] }
 0x1ee   : > { %v962_v27 = vadd.f32 %v961_v26, %v849_v31  ;;  %v3627_v26 = vld [vmem:[#allocation44_spill] sm:$0xff] }
 0x1f0   : > { %v1075_v61 = vadd.f32 %v1074_v63, %v962_v27  ;;  %v3628_v63 = vld [vmem:[#allocation45_spill] sm:$0xff] }
 0x1f1   : > { %v738_v32 = vpop.f32.mrf.mxu0 }
 0x1f2   : > { %v851_v33 = vpop.f32.mrf.mxu1  ;;  %1788 = vst [vmem:[%s2907_s12 + $0x1d0] sm:$0xff] %v1075_v61  ;;  %1367 = vmatmul.f32.gmra.mxu2 %v3605_v34  ;;  %1480 = vmatmul.f32.gmra.mxu3 %v3606_v10  ;;  %v3629_v10 = vld [vmem:[#allocation46_spill] sm:$0xff] }
 0x1f3   : > { %v852_v35 = vadd.f32 %v851_v33, %v738_v32 }
 0x1f4   : > { %1141 = vmatmul.f32.gmra.mxu0 %v3607_v8 }
 0x1f5   : > { %1254 = vmatmul.f32.gmra.mxu1 %v3608_v50  ;;  %v964_v40 = vpop.f32.mrf.mxu2  ;;  %v1077_v41 = vpop.f32.mrf.mxu3  ;;  %v3630_v50 = vld [vmem:[#allocation47_spill] sm:$0xff] }
 0x1f6   : > { %v965_v42 = vadd.f32 %v964_v40, %v852_v35  ;;  %v3631_v40 = vld [vmem:[#allocation48_spill] sm:$0xff] }
 0x1f8   : > { %v1078_v43 = vadd.f32 %v1077_v41, %v965_v42  ;;  %v3632_v41 = vld [vmem:[#allocation49_spill] sm:$0xff] }
 0x1f9   : > { %v741_v9 = vpop.f32.mrf.mxu0 }
 0x1fa   : > { %v854_v62 = vpop.f32.mrf.mxu1  ;;  %1790 = vst [vmem:[%s2907_s12 + $0x1e0] sm:$0xff] %v1078_v43  ;;  %1370 = vmatmul.f32.gmra.mxu2 %v3609_v51  ;;  %1483 = vmatmul.f32.gmra.mxu3 %v3610_v45  ;;  %v3633_v45 = vld [vmem:[#allocation50_spill] sm:$0xff] }
 0x1fb   : > { %v855_v44 = vadd.f32 %v854_v62, %v741_v9 }
 0x1fc   : > { %1144 = vmatmul.f32.gmra.mxu0 %v3611_v46 }
 0x1fd   : > { %1257 = vmatmul.f32.gmra.mxu1 %v3612_v47  ;;  %v967_v48 = vpop.f32.mrf.mxu2  ;;  %v1080_v14 = vpop.f32.mrf.mxu3  ;;  %v3634_v47 = vld [vmem:[#allocation51_spill] sm:$0xff] }
 0x1fe   : > { %v968_v15 = vadd.f32 %v967_v48, %v855_v44  ;;  %v3635_v48 = vld [vmem:[#allocation52_spill] sm:$0xff] }
 0x200   : > { %v1081_v52 = vadd.f32 %v1080_v14, %v968_v15  ;;  %v3636_v14 = vld [vmem:[#allocation53_spill] sm:$0xff] }
 0x201   : > { %v1100_v53 = vpop.f32.mrf.mxu0 }
 0x202   : > { %v1213_v54 = vpop.f32.mrf.mxu1  ;;  %1792 = vst [vmem:[%s2907_s12 + $0x1f0] sm:$0xff] %v1081_v52  ;;  %1373 = vmatmul.f32.gmra.mxu2 %v3613_v55  ;;  %1486 = vmatmul.f32.gmra.mxu3 %v3614_v18  ;;  %v3637_v18 = vld [vmem:[#allocation54_spill] sm:$0xff] }
 0x203   : > { %v1214_v16 = vadd.f32 %v1213_v54, %v1100_v53 }
 0x204   : > { %1147 = vmatmul.f32.gmra.mxu0 %v3615_v49 }
 0x205   : > { %1260 = vmatmul.f32.gmra.mxu1 %v3616_v56  ;;  %v1326_v57 = vpop.f32.mrf.mxu2  ;;  %v1439_v58 = vpop.f32.mrf.mxu3  ;;  %v3638_v56 = vld [vmem:[#allocation55_spill] sm:$0xff] }
 0x206   : > { %v1327_v59 = vadd.f32 %v1326_v57, %v1214_v16  ;;  %v3639_v57 = vld [vmem:[#allocation56_spill] sm:$0xff] }
 0x208   : > { %v1440_v39 = vadd.f32 %v1439_v58, %v1327_v59  ;;  %v3640_v58 = vld [vmem:[#allocation57_spill] sm:$0xff] }
 0x209   : > { %v1103_v11 = vpop.f32.mrf.mxu0 }
 0x20a   : > { %v1216_v20 = vpop.f32.mrf.mxu1  ;;  %1731 = vst [vmem:[%s2907_s12 + $0x8] sm:$0xff] %v1440_v39  ;;  %1376 = vmatmul.f32.gmra.mxu2 %v3617_v0  ;;  %1489 = vmatmul.f32.gmra.mxu3 %v3618_v2  ;;  %v3641_v2 = vld [vmem:[#allocation58_spill] sm:$0xff] }
 0x20b   : > { %v1217_v1 = vadd.f32 %v1216_v20, %v1103_v11 }
 0x20c   : > { %1150 = vmatmul.f32.gmra.mxu0 %v3619_v3 }
 0x20d   : > { %1263 = vmatmul.f32.gmra.mxu1 %v3620_v21  ;;  %v1329_v22 = vpop.f32.mrf.mxu2  ;;  %v1442_v23 = vpop.f32.mrf.mxu3  ;;  %v3642_v21 = vld [vmem:[#allocation59_spill] sm:$0xff] }
 0x20e   : > { %v1330_v4 = vadd.f32 %v1329_v22, %v1217_v1  ;;  %v3643_v22 = vld [vmem:[#allocation60_spill] sm:$0xff] }
 0x210   : > { %v1443_v5 = vadd.f32 %v1442_v23, %v1330_v4  ;;  %v3644_v23 = vld [vmem:[#allocation61_spill] sm:$0xff] }
 0x211   : > { %v1106_v6 = vpop.f32.mrf.mxu0 }
 0x212   : > { %v1219_v7 = vpop.f32.mrf.mxu1  ;;  %1733 = vst [vmem:[%s2907_s12 + $0x18] sm:$0xff] %v1443_v5  ;;  %1379 = vmatmul.f32.gmra.mxu2 %v3621_v60  ;;  %1492 = vmatmul.f32.gmra.mxu3 %v3622_v37  ;;  %v3645_v37 = vld [vmem:[#allocation62_spill] sm:$0xff] }
 0x213   : > { %v1220_v38 = vadd.f32 %v1219_v7, %v1106_v6 }
 0x214   : > { %1153 = vmatmul.f32.gmra.mxu0 %v3623_v12 }
 0x215   : > { %1266 = vmatmul.f32.gmra.mxu1 %v3624_v13  ;;  %v1332_v17 = vpop.f32.mrf.mxu2  ;;  %v1445_v19 = vpop.f32.mrf.mxu3  ;;  %v3646_v13 = vld [vmem:[#allocation63_spill] sm:$0xff] }
 0x216   : > { %v1333_v28 = vadd.f32 %v1332_v17, %v1220_v38  ;;  %v3647_v17 = vld [vmem:[#allocation64_spill] sm:$0xff] }
 0x218   : > { %v1446_v29 = vadd.f32 %v1445_v19, %v1333_v28  ;;  %v3648_v19 = vld [vmem:[#allocation65_spill] sm:$0xff] }
 0x219   : > { %v1109_v30 = vpop.f32.mrf.mxu0 }
 0x21a   : > { %v1222_v31 = vpop.f32.mrf.mxu1  ;;  %1735 = vst [vmem:[%s2907_s12 + $0x28] sm:$0xff] %v1446_v29  ;;  %1382 = vmatmul.f32.gmra.mxu2 %v3625_v36  ;;  %1495 = vmatmul.f32.gmra.mxu3 %v3626_v25  ;;  %v3649_v25 = vld [vmem:[#allocation66_spill] sm:$0xff] }
 0x21b   : > { %v1223_v24 = vadd.f32 %v1222_v31, %v1109_v30 }
 0x21c   : > { %1156 = vmatmul.f32.gmra.mxu0 %v3627_v26 }
 0x21d   : > { %1269 = vmatmul.f32.gmra.mxu1 %v3628_v63  ;;  %v1335_v27 = vpop.f32.mrf.mxu2  ;;  %v1448_v61 = vpop.f32.mrf.mxu3  ;;  %v3650_v63 = vld [vmem:[#allocation67_spill] sm:$0xff] }
 0x21e   : > { %v1336_v32 = vadd.f32 %v1335_v27, %v1223_v24  ;;  %v3651_v27 = vld [vmem:[#allocation68_spill] sm:$0xff] }
 0x220   : > { %v1449_v33 = vadd.f32 %v1448_v61, %v1336_v32  ;;  %v3652_v61 = vld [vmem:[#allocation69_spill] sm:$0xff] }
 0x221   : > { %v1112_v34 = vpop.f32.mrf.mxu0 }
 0x222   : > { %v1225_v35 = vpop.f32.mrf.mxu1  ;;  %1737 = vst [vmem:[%s2907_s12 + $0x38] sm:$0xff] %v1449_v33  ;;  %1385 = vmatmul.f32.gmra.mxu2 %v3629_v10  ;;  %1498 = vmatmul.f32.gmra.mxu3 %v3630_v50  ;;  %v3653_v50 = vld [vmem:[#allocation70_spill] sm:$0xff] }
 0x223   : > { %v1226_v8 = vadd.f32 %v1225_v35, %v1112_v34 }
 0x224   : > { %1159 = vmatmul.f32.gmra.mxu0 %v3631_v40 }
 0x225   : > { %1272 = vmatmul.f32.gmra.mxu1 %v3632_v41  ;;  %v1338_v42 = vpop.f32.mrf.mxu2  ;;  %v1451_v43 = vpop.f32.mrf.mxu3  ;;  %v3654_v41 = vld [vmem:[#allocation71_spill] sm:$0xff] }
 0x226   : > { %v1339_v9 = vadd.f32 %v1338_v42, %v1226_v8  ;;  %v3655_v42 = vld [vmem:[#allocation72_spill] sm:$0xff] }
 0x228   : > { %v1452_v62 = vadd.f32 %v1451_v43, %v1339_v9  ;;  %v3656_v43 = vld [vmem:[#allocation73_spill] sm:$0xff] }
 0x229   : > { %v1115_v51 = vpop.f32.mrf.mxu0 }
 0x22a   : > { %v1228_v44 = vpop.f32.mrf.mxu1  ;;  %1739 = vst [vmem:[%s2907_s12 + $0x48] sm:$0xff] %v1452_v62  ;;  %1388 = vmatmul.f32.gmra.mxu2 %v3633_v45  ;;  %1501 = vmatmul.f32.gmra.mxu3 %v3634_v47  ;;  %v3657_v47 = vld [vmem:[#allocation74_spill] sm:$0xff] }
 0x22b   : > { %v1229_v46 = vadd.f32 %v1228_v44, %v1115_v51 }
 0x22c   : > { %1162 = vmatmul.f32.gmra.mxu0 %v3635_v48 }
 0x22d   : > { %1275 = vmatmul.f32.gmra.mxu1 %v3636_v14  ;;  %v1341_v15 = vpop.f32.mrf.mxu2  ;;  %v1454_v52 = vpop.f32.mrf.mxu3  ;;  %v3658_v14 = vld [vmem:[#allocation75_spill] sm:$0xff] }
 0x22e   : > { %v1342_v53 = vadd.f32 %v1341_v15, %v1229_v46  ;;  %v3659_v15 = vld [vmem:[#allocation76_spill] sm:$0xff] }
 0x230   : > { %v1455_v54 = vadd.f32 %v1454_v52, %v1342_v53  ;;  %v3660_v52 = vld [vmem:[#allocation77_spill] sm:$0xff] }
 0x231   : > { %v1118_v55 = vpop.f32.mrf.mxu0 }
 0x232   : > { %v1231_v16 = vpop.f32.mrf.mxu1  ;;  %1741 = vst [vmem:[%s2907_s12 + $0x58] sm:$0xff] %v1455_v54  ;;  %1391 = vmatmul.f32.gmra.mxu2 %v3637_v18  ;;  %1504 = vmatmul.f32.gmra.mxu3 %v3638_v56  ;;  %v3661_v56 = vld [vmem:[#allocation78_spill] sm:$0xff] }
 0x233   : > { %v1232_v49 = vadd.f32 %v1231_v16, %v1118_v55 }
 0x234   : > { %1165 = vmatmul.f32.gmra.mxu0 %v3639_v57 }
 0x235   : > { %1278 = vmatmul.f32.gmra.mxu1 %v3640_v58  ;;  %v1344_v59 = vpop.f32.mrf.mxu2  ;;  %v1457_v39 = vpop.f32.mrf.mxu3  ;;  %v3662_v58 = vld [vmem:[#allocation79_spill] sm:$0xff] }
 0x236   : > { %v1345_v11 = vadd.f32 %v1344_v59, %v1232_v49  ;;  %v3663_v59 = vld [vmem:[#allocation80_spill] sm:$0xff] }
 0x238   : > { %v1458_v20 = vadd.f32 %v1457_v39, %v1345_v11  ;;  %v3664_v39 = vld [vmem:[#allocation81_spill] sm:$0xff] }
 0x239   : > { %v1121_v0 = vpop.f32.mrf.mxu0 }
 0x23a   : > { %v1234_v1 = vpop.f32.mrf.mxu1  ;;  %1743 = vst [vmem:[%s2907_s12 + $0x68] sm:$0xff] %v1458_v20  ;;  %1394 = vmatmul.f32.gmra.mxu2 %v3641_v2  ;;  %1507 = vmatmul.f32.gmra.mxu3 %v3642_v21  ;;  %v3665_v21 = vld [vmem:[#allocation82_spill] sm:$0xff] }
 0x23b   : > { %v1235_v3 = vadd.f32 %v1234_v1, %v1121_v0 }
 0x23c   : > { %1168 = vmatmul.f32.gmra.mxu0 %v3643_v22 }
 0x23d   : > { %1281 = vmatmul.f32.gmra.mxu1 %v3644_v23  ;;  %v1347_v4 = vpop.f32.mrf.mxu2  ;;  %v1460_v5 = vpop.f32.mrf.mxu3  ;;  %v3666_v23 = vld [vmem:[#allocation83_spill] sm:$0xff] }
 0x23e   : > { %v1348_v6 = vadd.f32 %v1347_v4, %v1235_v3  ;;  %v3667_v4 = vld [vmem:[#allocation84_spill] sm:$0xff] }
 0x240   : > { %v1461_v7 = vadd.f32 %v1460_v5, %v1348_v6  ;;  %v3668_v5 = vld [vmem:[#allocation85_spill] sm:$0xff] }
 0x241   : > { %v1124_v60 = vpop.f32.mrf.mxu0 }
 0x242   : > { %v1237_v38 = vpop.f32.mrf.mxu1  ;;  %1745 = vst [vmem:[%s2907_s12 + $0x78] sm:$0xff] %v1461_v7  ;;  %1397 = vmatmul.f32.gmra.mxu2 %v3645_v37  ;;  %1510 = vmatmul.f32.gmra.mxu3 %v3646_v13  ;;  %v3669_v13 = vld [vmem:[#allocation86_spill] sm:$0xff] }
 0x243   : > { %v1238_v12 = vadd.f32 %v1237_v38, %v1124_v60 }
 0x244   : > { %1171 = vmatmul.f32.gmra.mxu0 %v3647_v17 }
 0x245   : > { %1284 = vmatmul.f32.gmra.mxu1 %v3648_v19  ;;  %v1350_v28 = vpop.f32.mrf.mxu2  ;;  %v1463_v29 = vpop.f32.mrf.mxu3  ;;  %v3670_v19 = vld [vmem:[#allocation87_spill] sm:$0xff] }
 0x246   : > { %v1351_v30 = vadd.f32 %v1350_v28, %v1238_v12  ;;  %v3671_v28 = vld [vmem:[#allocation88_spill] sm:$0xff] }
 0x248   : > { %v1464_v31 = vadd.f32 %v1463_v29, %v1351_v30  ;;  %v3672_v29 = vld [vmem:[#allocation89_spill] sm:$0xff] }
 0x249   : > { %v1127_v36 = vpop.f32.mrf.mxu0 }
 0x24a   : > { %v1240_v24 = vpop.f32.mrf.mxu1  ;;  %1747 = vst [vmem:[%s2907_s12 + $0x88] sm:$0xff] %v1464_v31  ;;  %1400 = vmatmul.f32.gmra.mxu2 %v3649_v25  ;;  %1513 = vmatmul.f32.gmra.mxu3 %v3650_v63  ;;  %v3673_v63 = vld [vmem:[#allocation90_spill] sm:$0xff] }
 0x24b   : > { %v1241_v26 = vadd.f32 %v1240_v24, %v1127_v36 }
 0x24c   : > { %1174 = vmatmul.f32.gmra.mxu0 %v3651_v27 }
 0x24d   : > { %1287 = vmatmul.f32.gmra.mxu1 %v3652_v61  ;;  %v1353_v32 = vpop.f32.mrf.mxu2  ;;  %v1466_v33 = vpop.f32.mrf.mxu3  ;;  %v3674_v61 = vld [vmem:[#allocation91_spill] sm:$0xff] }
 0x24e   : > { %v1354_v34 = vadd.f32 %v1353_v32, %v1241_v26  ;;  %v3675_v32 = vld [vmem:[#allocation92_spill] sm:$0xff] }
 0x250   : > { %v1467_v35 = vadd.f32 %v1466_v33, %v1354_v34  ;;  %v3676_v33 = vld [vmem:[#allocation93_spill] sm:$0xff] }
 0x251   : > { %v1130_v10 = vpop.f32.mrf.mxu0 }
 0x252   : > { %v1243_v8 = vpop.f32.mrf.mxu1  ;;  %1749 = vst [vmem:[%s2907_s12 + $0x98] sm:$0xff] %v1467_v35  ;;  %1403 = vmatmul.f32.gmra.mxu2 %v3653_v50  ;;  %1516 = vmatmul.f32.gmra.mxu3 %v3654_v41 }
 0x253   : > { %v1244_v40 = vadd.f32 %v1243_v8, %v1130_v10 }
 0x254   : > { %1177 = vmatmul.f32.gmra.mxu0 %v3655_v42 }
 0x255   : > { %1290 = vmatmul.f32.gmra.mxu1 %v3656_v43  ;;  %v1356_v9 = vpop.f32.mrf.mxu2  ;;  %v1469_v62 = vpop.f32.mrf.mxu3 }
 0x256   : > { %v1357_v51 = vadd.f32 %v1356_v9, %v1244_v40 }
 0x258   : > { %v1470_v44 = vadd.f32 %v1469_v62, %v1357_v51 }
 0x259   : > { %v1133_v45 = vpop.f32.mrf.mxu0 }
 0x25a   : > { %v1246_v46 = vpop.f32.mrf.mxu1  ;;  %1751 = vst [vmem:[%s2907_s12 + $0xa8] sm:$0xff] %v1470_v44  ;;  %1406 = vmatmul.f32.gmra.mxu2 %v3657_v47  ;;  %1519 = vmatmul.f32.gmra.mxu3 %v3658_v14 }
 0x25b   : > { %v1247_v48 = vadd.f32 %v1246_v46, %v1133_v45 }
 0x25c   : > { %1180 = vmatmul.f32.gmra.mxu0 %v3659_v15 }
 0x25d   : > { %1293 = vmatmul.f32.gmra.mxu1 %v3660_v52  ;;  %v1359_v53 = vpop.f32.mrf.mxu2  ;;  %v1472_v54 = vpop.f32.mrf.mxu3 }
 0x25e   : > { %v1360_v55 = vadd.f32 %v1359_v53, %v1247_v48 }
 0x260   : > { %v1473_v16 = vadd.f32 %v1472_v54, %v1360_v55 }
 0x261   : > { %v1136_v18 = vpop.f32.mrf.mxu0 }
 0x262   : > { %v1249_v49 = vpop.f32.mrf.mxu1  ;;  %1753 = vst [vmem:[%s2907_s12 + $0xb8] sm:$0xff] %v1473_v16  ;;  %1409 = vmatmul.f32.gmra.mxu2 %v3661_v56  ;;  %1522 = vmatmul.f32.gmra.mxu3 %v3662_v58 }
 0x263   : > { %v1250_v57 = vadd.f32 %v1249_v49, %v1136_v18 }
 0x264   : > { %1183 = vmatmul.f32.gmra.mxu0 %v3663_v59 }
 0x265   : > { %1296 = vmatmul.f32.gmra.mxu1 %v3664_v39  ;;  %v1362_v11 = vpop.f32.mrf.mxu2  ;;  %v1475_v20 = vpop.f32.mrf.mxu3 }
 0x266   : > { %v1363_v0 = vadd.f32 %v1362_v11, %v1250_v57 }
 0x268   : > { %v1476_v1 = vadd.f32 %v1475_v20, %v1363_v0 }
 0x269   : > { %v1139_v2 = vpop.f32.mrf.mxu0 }
 0x26a   : > { %v1252_v3 = vpop.f32.mrf.mxu1  ;;  %1755 = vst [vmem:[%s2907_s12 + $0xc8] sm:$0xff] %v1476_v1  ;;  %1412 = vmatmul.f32.gmra.mxu2 %v3665_v21  ;;  %1525 = vmatmul.f32.gmra.mxu3 %v3666_v23 }
 0x26b   : > { %v1253_v22 = vadd.f32 %v1252_v3, %v1139_v2 }
 0x26c   : > { %1186 = vmatmul.f32.gmra.mxu0 %v3667_v4 }
 0x26d   : > { %1299 = vmatmul.f32.gmra.mxu1 %v3668_v5  ;;  %v1365_v6 = vpop.f32.mrf.mxu2  ;;  %v1478_v7 = vpop.f32.mrf.mxu3 }
 0x26e   : > { %v1366_v60 = vadd.f32 %v1365_v6, %v1253_v22 }
 0x270   : > { %v1479_v38 = vadd.f32 %v1478_v7, %v1366_v60 }
 0x271   : > { %v1142_v37 = vpop.f32.mrf.mxu0 }
 0x272   : > { %v1255_v12 = vpop.f32.mrf.mxu1  ;;  %1757 = vst [vmem:[%s2907_s12 + $0xd8] sm:$0xff] %v1479_v38  ;;  %1415 = vmatmul.f32.gmra.mxu2 %v3669_v13  ;;  %1528 = vmatmul.f32.gmra.mxu3 %v3670_v19 }
 0x273   : > { %v1256_v17 = vadd.f32 %v1255_v12, %v1142_v37 }
 0x274   : > { %1189 = vmatmul.f32.gmra.mxu0 %v3671_v28 }
 0x275   : > { %1302 = vmatmul.f32.gmra.mxu1 %v3672_v29  ;;  %v1368_v30 = vpop.f32.mrf.mxu2  ;;  %v1481_v31 = vpop.f32.mrf.mxu3 }
 0x276   : > { %v1369_v36 = vadd.f32 %v1368_v30, %v1256_v17 }
 0x278   : > { %v1482_v24 = vadd.f32 %v1481_v31, %v1369_v36 }
 0x279   : > { %v1145_v25 = vpop.f32.mrf.mxu0 }
 0x27a   : > { %v1258_v26 = vpop.f32.mrf.mxu1  ;;  %1759 = vst [vmem:[%s2907_s12 + $0xe8] sm:$0xff] %v1482_v24  ;;  %1418 = vmatmul.f32.gmra.mxu2 %v3673_v63  ;;  %1531 = vmatmul.f32.gmra.mxu3 %v3674_v61 }
 0x27b   : > { %v1259_v27 = vadd.f32 %v1258_v26, %v1145_v25 }
 0x27c   : > { %1192 = vmatmul.f32.gmra.mxu0 %v3675_v32 }
 0x27d   : > { %1305 = vmatmul.f32.gmra.mxu1 %v3676_v33  ;;  %v1371_v34 = vpop.f32.mrf.mxu2  ;;  %v1484_v35 = vpop.f32.mrf.mxu3 }
 0x27e   : > { %v1372_v10 = vadd.f32 %v1371_v34, %v1259_v27 }
 0x280   : > { %v1485_v8 = vadd.f32 %v1484_v35, %v1372_v10 }
 0x281   : > { %v1148_v50 = vpop.f32.mrf.mxu0 }
 0x282   : > { %v1261_v40 = vpop.f32.mrf.mxu1  ;;  %1761 = vst [vmem:[%s2907_s12 + $0xf8] sm:$0xff] %v1485_v8 }
 0x283   : > { %v1262_v41 = vadd.f32 %v1261_v40, %v1148_v50 }
 0x285   : > { %v1374_v42 = vpop.f32.mrf.mxu2  ;;  %v1487_v43 = vpop.f32.mrf.mxu3 }
 0x286   : > { %v1375_v9 = vadd.f32 %v1374_v42, %v1262_v41 }
 0x288   : > { %v1488_v62 = vadd.f32 %v1487_v43, %v1375_v9 }
 0x289   : > { %v1151_v51 = vpop.f32.mrf.mxu0 }
 0x28a   : > { %v1264_v44 = vpop.f32.mrf.mxu1  ;;  %1763 = vst [vmem:[%s2907_s12 + $0x108] sm:$0xff] %v1488_v62 }
 0x28b   : > { %v1265_v45 = vadd.f32 %v1264_v44, %v1151_v51 }
 0x28d   : > { %v1377_v46 = vpop.f32.mrf.mxu2  ;;  %v1490_v47 = vpop.f32.mrf.mxu3 }
 0x28e   : > { %v1378_v48 = vadd.f32 %v1377_v46, %v1265_v45 }
 0x290   : > { %v1491_v14 = vadd.f32 %v1490_v47, %v1378_v48 }
 0x291   : > { %v1154_v15 = vpop.f32.mrf.mxu0 }
 0x292   : > { %v1267_v52 = vpop.f32.mrf.mxu1  ;;  %1765 = vst [vmem:[%s2907_s12 + $0x118] sm:$0xff] %v1491_v14 }
 0x293   : > { %v1268_v53 = vadd.f32 %v1267_v52, %v1154_v15 }
 0x295   : > { %v1380_v54 = vpop.f32.mrf.mxu2  ;;  %v1493_v55 = vpop.f32.mrf.mxu3 }
 0x296   : > { %v1381_v16 = vadd.f32 %v1380_v54, %v1268_v53 }
 0x298   : > { %v1494_v18 = vadd.f32 %v1493_v55, %v1381_v16 }
 0x299   : > { %v1157_v49 = vpop.f32.mrf.mxu0 }
 0x29a   : > { %v1270_v56 = vpop.f32.mrf.mxu1  ;;  %1767 = vst [vmem:[%s2907_s12 + $0x128] sm:$0xff] %v1494_v18 }
 0x29b   : > { %v1271_v57 = vadd.f32 %v1270_v56, %v1157_v49 }
 0x29d   : > { %v1383_v58 = vpop.f32.mrf.mxu2  ;;  %v1496_v59 = vpop.f32.mrf.mxu3 }
 0x29e   : > { %v1384_v39 = vadd.f32 %v1383_v58, %v1271_v57 }
 0x2a0   : > { %v1497_v11 = vadd.f32 %v1496_v59, %v1384_v39 }
 0x2a1   : > { %v1160_v20 = vpop.f32.mrf.mxu0 }
 0x2a2   : > { %v1273_v0 = vpop.f32.mrf.mxu1  ;;  %1769 = vst [vmem:[%s2907_s12 + $0x138] sm:$0xff] %v1497_v11 }
 0x2a3   : > { %v1274_v1 = vadd.f32 %v1273_v0, %v1160_v20 }
 0x2a5   : > { %v1386_v2 = vpop.f32.mrf.mxu2  ;;  %v1499_v3 = vpop.f32.mrf.mxu3 }
 0x2a6   : > { %v1387_v21 = vadd.f32 %v1386_v2, %v1274_v1 }
 0x2a8   : > { %v1500_v22 = vadd.f32 %v1499_v3, %v1387_v21 }
 0x2a9   : > { %v1163_v23 = vpop.f32.mrf.mxu0 }
 0x2aa   : > { %v1276_v4 = vpop.f32.mrf.mxu1  ;;  %1771 = vst [vmem:[%s2907_s12 + $0x148] sm:$0xff] %v1500_v22 }
 0x2ab   : > { %v1277_v5 = vadd.f32 %v1276_v4, %v1163_v23 }
 0x2ad   : > { %v1389_v6 = vpop.f32.mrf.mxu2  ;;  %v1502_v7 = vpop.f32.mrf.mxu3 }
 0x2ae   : > { %v1390_v60 = vadd.f32 %v1389_v6, %v1277_v5 }
 0x2b0   : > { %v1503_v38 = vadd.f32 %v1502_v7, %v1390_v60 }
 0x2b1   : > { %v1166_v37 = vpop.f32.mrf.mxu0 }
 0x2b2   : > { %v1279_v12 = vpop.f32.mrf.mxu1  ;;  %1773 = vst [vmem:[%s2907_s12 + $0x158] sm:$0xff] %v1503_v38 }
 0x2b3   : > { %v1280_v13 = vadd.f32 %v1279_v12, %v1166_v37 }
 0x2b5   : > { %v1392_v17 = vpop.f32.mrf.mxu2  ;;  %v1505_v19 = vpop.f32.mrf.mxu3 }
 0x2b6   : > { %v1393_v28 = vadd.f32 %v1392_v17, %v1280_v13 }
 0x2b8   : > { %v1506_v29 = vadd.f32 %v1505_v19, %v1393_v28 }
 0x2b9   : > { %v1169_v30 = vpop.f32.mrf.mxu0 }
 0x2ba   : > { %v1282_v31 = vpop.f32.mrf.mxu1  ;;  %1775 = vst [vmem:[%s2907_s12 + $0x168] sm:$0xff] %v1506_v29 }
 0x2bb   : > { %v1283_v36 = vadd.f32 %v1282_v31, %v1169_v30 }
 0x2bd   : > { %v1395_v24 = vpop.f32.mrf.mxu2  ;;  %v1508_v25 = vpop.f32.mrf.mxu3 }
 0x2be   : > { %v1396_v26 = vadd.f32 %v1395_v24, %v1283_v36 }
 0x2c0   : > { %v1509_v63 = vadd.f32 %v1508_v25, %v1396_v26 }
 0x2c1   : > { %v1172_v27 = vpop.f32.mrf.mxu0 }
 0x2c2   : > { %v1285_v61 = vpop.f32.mrf.mxu1  ;;  %1777 = vst [vmem:[%s2907_s12 + $0x178] sm:$0xff] %v1509_v63 }
 0x2c3   : > { %v1286_v32 = vadd.f32 %v1285_v61, %v1172_v27 }
 0x2c5   : > { %v1398_v33 = vpop.f32.mrf.mxu2  ;;  %v1511_v34 = vpop.f32.mrf.mxu3 }
 0x2c6   : > { %v1399_v35 = vadd.f32 %v1398_v33, %v1286_v32 }
 0x2c8   : > { %v1512_v10 = vadd.f32 %v1511_v34, %v1399_v35 }
 0x2c9   : > { %v1175_v8 = vpop.f32.mrf.mxu0 }
 0x2ca   : > { %v1288_v50 = vpop.f32.mrf.mxu1  ;;  %1779 = vst [vmem:[%s2907_s12 + $0x188] sm:$0xff] %v1512_v10 }
 0x2cb   : > { %v1289_v40 = vadd.f32 %v1288_v50, %v1175_v8 }
 0x2cd   : > { %v1401_v41 = vpop.f32.mrf.mxu2  ;;  %v1514_v42 = vpop.f32.mrf.mxu3 }
 0x2ce   : > { %v1402_v43 = vadd.f32 %v1401_v41, %v1289_v40 }
 0x2d0   : > { %v1515_v9 = vadd.f32 %v1514_v42, %v1402_v43 }
 0x2d1   : > { %v1178_v62 = vpop.f32.mrf.mxu0 }
 0x2d2   : > { %v1291_v51 = vpop.f32.mrf.mxu1  ;;  %1781 = vst [vmem:[%s2907_s12 + $0x198] sm:$0xff] %v1515_v9 }
 0x2d3   : > { %v1292_v44 = vadd.f32 %v1291_v51, %v1178_v62 }
 0x2d5   : > { %v1404_v45 = vpop.f32.mrf.mxu2  ;;  %v1517_v46 = vpop.f32.mrf.mxu3 }
 0x2d6   : > { %v1405_v47 = vadd.f32 %v1404_v45, %v1292_v44 }
 0x2d8   : > { %v1518_v48 = vadd.f32 %v1517_v46, %v1405_v47 }
 0x2d9   : > { %v1181_v14 = vpop.f32.mrf.mxu0 }
 0x2da   : > { %v1294_v15 = vpop.f32.mrf.mxu1  ;;  %1783 = vst [vmem:[%s2907_s12 + $0x1a8] sm:$0xff] %v1518_v48 }
 0x2db   : > { %v1295_v52 = vadd.f32 %v1294_v15, %v1181_v14 }
 0x2dd   : > { %v1407_v53 = vpop.f32.mrf.mxu2  ;;  %v1520_v54 = vpop.f32.mrf.mxu3 }
 0x2de   : > { %v1408_v55 = vadd.f32 %v1407_v53, %v1295_v52 }
 0x2e0   : > { %v1521_v16 = vadd.f32 %v1520_v54, %v1408_v55 }
 0x2e1   : > { %v1184_v18 = vpop.f32.mrf.mxu0 }
 0x2e2   : > { %v1297_v49 = vpop.f32.mrf.mxu1  ;;  %1785 = vst [vmem:[%s2907_s12 + $0x1b8] sm:$0xff] %v1521_v16 }
 0x2e3   : > { %v1298_v56 = vadd.f32 %v1297_v49, %v1184_v18 }
 0x2e5   : > { %v1410_v57 = vpop.f32.mrf.mxu2  ;;  %v1523_v58 = vpop.f32.mrf.mxu3 }
 0x2e6   : > { %v1411_v59 = vadd.f32 %v1410_v57, %v1298_v56 }
 0x2e8   : > { %v1524_v39 = vadd.f32 %v1523_v58, %v1411_v59 }
 0x2e9   : > { %v1187_v11 = vpop.f32.mrf.mxu0 }
 0x2ea   : > { %v1300_v20 = vpop.f32.mrf.mxu1  ;;  %1787 = vst [vmem:[%s2907_s12 + $0x1c8] sm:$0xff] %v1524_v39 }
 0x2eb   : > { %v1301_v0 = vadd.f32 %v1300_v20, %v1187_v11 }
 0x2ed   : > { %v1413_v1 = vpop.f32.mrf.mxu2  ;;  %v1526_v2 = vpop.f32.mrf.mxu3 }
 0x2ee   : > { %v1414_v3 = vadd.f32 %v1413_v1, %v1301_v0 }
 0x2f0   : > { %v1527_v21 = vadd.f32 %v1526_v2, %v1414_v3 }
 0x2f1   : > { %v1190_v22 = vpop.f32.mrf.mxu0 }
 0x2f2   : > { %v1303_v23 = vpop.f32.mrf.mxu1  ;;  %1789 = vst [vmem:[%s2907_s12 + $0x1d8] sm:$0xff] %v1527_v21 }
 0x2f3   : > { %v1304_v4 = vadd.f32 %v1303_v23, %v1190_v22 }
 0x2f5   : > { %v1416_v5 = vpop.f32.mrf.mxu2  ;;  %v1529_v6 = vpop.f32.mrf.mxu3 }
 0x2f6   : > { %v1417_v7 = vadd.f32 %v1416_v5, %v1304_v4 }
 0x2f8   : > { %v1530_v60 = vadd.f32 %v1529_v6, %v1417_v7 }
 0x2f9   : > { %v1193_v38 = vpop.f32.mrf.mxu0 }
 0x2fa   : > { %v1306_v37 = vpop.f32.mrf.mxu1  ;;  %1791 = vst [vmem:[%s2907_s12 + $0x1e8] sm:$0xff] %v1530_v60 }
 0x2fb   : > { %v1307_v12 = vadd.f32 %v1306_v37, %v1193_v38 }
 0x2fd   : > { %v1419_v13 = vpop.f32.mrf.mxu2  ;;  %v1532_v17 = vpop.f32.mrf.mxu3 }
 0x2fe   : > { %v1420_v19 = vadd.f32 %v1419_v13, %v1307_v12 }
 0x300   : > { %v1533_v28 = vadd.f32 %v1532_v17, %v1420_v19 }
 0x302   : > { %1793 = vst [vmem:[%s2907_s12 + $0x1f8] sm:$0xff] %v1533_v28 }
 0x303   : > { %2187 = shalt.err (!%p2184_p10)
}
 0x304   : > { %s2314_s28 = smov 256   ;;  %s2315_s12 = smov 1024  }
 0x305   : > { %s2316_s5 = smov 16  }
 0x306   : > { %1964 = dma.vmem_to_hbm [thread:$0]  (%p2478_p1), %s1811_s19, 8192, %s1813_s24, %s1795_s15, %s2314_s28, %s2315_s12, %s2316_s5  }
 0x307 PF: > { %p1978_p12 = scmp.ge.s32.totalorder %s2310_s22, 2  ;;  %s1827_s29 = sand.u32 1, %s2258_s9  }
 0x308   : > { %s1828_s21 = scalar_lea.sflag [#allocation5], %s1827_s29 }
 0x309   : > { %p1974_p3 = pnand %p1978_p12, %p2493_p5 }
 0x30b   : > { %p1975_p13 = pneg %p1974_p3 }
 0x30d   : > { %2253 = dma.done.wait (%p1975_p13), %s1828_s21, 8192  }
 0x30e   : > { %2255 = vsyncadd (%p1975_p13), %s1828_s21, 4294959104  ;;  %s21_s22 = sadd.s32 1, %s2310_s22   ;;  %s3681_s18 = sld [smem:[#allocation16_spill]] }
 0x30f   : > { %p3372_p0 = scmp.ge.s32.totalorder %s21_s22, 10   ;;  %s3682_s19 = sld [smem:[#allocation13_spill]] }
 0x310   : > { %s3683_s27 = sld [smem:[#allocation14_spill]]  ;;  %s3685_s9 = smov %s2262_s10 }
 0x311   : > { %s3684_s21 = sld [smem:[#allocation15_spill]]  ;;  %s3686_s10 = smov %s2266_s11 }
 0x312   : > { %s3687_s11 = smov %s2490_s6  ;;  %s3688_s12 = smov %s2274_s13 }
 0x313   : > { %s3689_s13 = smov %s2278_s14  ;;  %s3691_s15 = smov %s2286_s16 }
 0x314   : > { %s3690_s14 = smov %s3681_s18  ;;  %s3692_s16 = smov %s2290_s17 }
 0x315   : > { %s3693_s17 = smov %s2487_s0  ;;  %s3694_s18 = smov %s2302_s20 }
 0x316   : > { %s3695_s20 = smov %s3683_s27  ;;  %20 = sbr.rel (!%p3372_p0) target bundleno = 15 (0xf), region = 94 }
 0x31b   :  { %1834 = vsyncpa [#allocation4], 1 }
 0x31c   :  { %1836 = vsyncpa [#allocation4 + $0x1], 1 }
 0x31d   :  { %1837 = vsyncpa [#allocation7], 1 }
 0x31e   :  { %1839 = vsyncpa [#allocation7 + $0x1], 1 }
 0x31f   :  { %1840 = vsyncpa [#allocation5], 1 }
 0x320   :  { %1842 = vsyncpa [#allocation5 + $0x1], 1 }

</bundles_post_ra>
